<compile_context>
chip_gen: v7x
topology: tpu7x:2x2x1
jax: 0.10.0
libtpu: 0.0.40
codegen_flags: <defaults>
</compile_context>

<pallas_src>
import functools

import jax
import jax.numpy as jnp
from jax.experimental import pallas as pl
from jax.experimental.pallas import tpu as pltpu


def _bilinear_kernel(x1_ref, x2_ref, w_ref, b_ref, out_ref, acc_ref, *, tile_i):
    """One grid step: accumulate a (TB, TO) partial of the bilinear form.

    x1_ref : (1, TB, TI)   image-feature block (rearranged in wrapper)
    x2_ref : (TB, J)       audio features (full feature dim)
    w_ref  : (TI, J, TO)   weight slab, layout (img_feat, aud_feat, out_feat)
    b_ref  : (1, TO)       bias tile
    out_ref: (TB, TO)
    acc_ref: (TB, TO) f32 scratch accumulator
    """
    i_t = pl.program_id(2)

    @pl.when(i_t == 0)
    def _():
        acc_ref[...] = jnp.zeros_like(acc_ref)

    x2 = x2_ref[...].astype(jnp.float32)      # (TB, J)
    x1 = x1_ref[0].astype(jnp.float32)        # (TB, TI)

    acc = jnp.zeros(acc_ref.shape, jnp.float32)
    for ii in range(tile_i):                  # static unroll, all slices static
        col = x1[:, ii:ii + 1]                # (TB, 1) scalar-per-row of img feature
        w_i = w_ref[ii].astype(jnp.float32)   # (J, TO)
        # sum_j (img[b,i] * aud[b,j]) * W[i,j,o]  -> one MXU matmul per i
        acc = acc + jnp.dot(x2 * col, w_i, preferred_element_type=jnp.float32)
    acc_ref[...] += acc

    @pl.when(i_t == pl.num_programs(2) - 1)
    def _():
        out_ref[...] = (acc_ref[...] + b_ref[...].astype(jnp.float32)).astype(out_ref.dtype)


def bilinear_fusion(img, aud, weight, bias, *, tile_o=128, tile_i=16, tile_b=None):
    """y[b,o] = bias[o] + sum_{i,j} img[b,i] * weight[o,i,j] * aud[b,j]."""
    B, I = img.shape
    B2, J = aud.shape
    O = weight.shape[0]
    assert B == B2
    assert weight.shape == (O, I, J)
    assert bias.shape == (O,)

    tile_b = B if tile_b is None else min(tile_b, B)
    tile_o = min(tile_o, O)
    tile_i = min(tile_i, I)
    assert B % tile_b == 0 and O % tile_o == 0 and I % tile_i == 0
    assert tile_b == B or tile_b % 8 == 0
    assert tile_o == O or tile_o % 128 == 0
    nb, no, ni = B // tile_b, O // tile_o, I // tile_i

    # Layout plumbing (wrapper side, free): weight -> (I, J, O); img -> (ni, B, TI);
    # bias -> (1, O). Kernel then only uses static slices and 2-D matmuls.
    w3 = jnp.transpose(weight, (1, 2, 0))                      # (I, J, O)
    x1r = img.reshape(B, ni, tile_i).transpose(1, 0, 2)        # (ni, B, TI)
    bias2 = bias.reshape(1, O)

    kernel = functools.partial(_bilinear_kernel, tile_i=tile_i)

    return pl.pallas_call(
        kernel,
        grid=(nb, no, ni),
        in_specs=[
            pl.BlockSpec((1, tile_b, tile_i), lambda b, o, i: (i, b, 0)),   # img (rearranged)
            pl.BlockSpec((tile_b, J),        lambda b, o, i: (b, 0)),       # aud
            pl.BlockSpec((tile_i, J, tile_o), lambda b, o, i: (i, 0, o)),   # weight slab
            pl.BlockSpec((1, tile_o),        lambda b, o, i: (0, o)),       # bias tile
        ],
        out_specs=pl.BlockSpec((tile_b, tile_o), lambda b, o, i: (b, o)),
        out_shape=jax.ShapeDtypeStruct((B, O), img.dtype),
        scratch_shapes=[pltpu.VMEM((tile_b, tile_o), jnp.float32)],
        compiler_params=pltpu.CompilerParams(
            dimension_semantics=("parallel", "parallel", "arbitrary")),
    )(x1r, aud, w3, bias2)


def reference(img, aud, weight, bias):
    """Pure-JAX reference of torch.nn.Bilinear forward."""
    return jnp.einsum("bi,oij,bj->bo", img, weight, aud) + bias


if __name__ == "__main__":
    # Small shapes consistent with BilinearFusion(img_dim, aud_dim, output_dim).
    B, IMG_DIM, AUD_DIM, OUT_DIM = 8, 64, 64, 256

    key = jax.random.PRNGKey(0)
    k1, k2, k3, k4 = jax.random.split(key, 4)
    image_features = jax.random.normal(k1, (B, IMG_DIM), jnp.float32)
    audio_features = jax.random.normal(k2, (B, AUD_DIM), jnp.float32)
    weight = jax.random.normal(k3, (OUT_DIM, IMG_DIM, AUD_DIM), jnp.float32) * 0.05
    bias = jax.random.normal(k4, (OUT_DIM,), jnp.float32) * 0.05

    out = bilinear_fusion(image_features, audio_features, weight, bias,
                          tile_o=128, tile_i=16)
    out = jax.block_until_ready(out)

    ref = reference(image_features, audio_features, weight, bias)
    assert out.shape == (B, OUT_DIM)
    assert jnp.allclose(out, ref, rtol=1e-3, atol=1e-3), float(jnp.max(jnp.abs(out - ref)))

    print("KERNEL_OK")
</pallas_src>

<mosaic_0001>
module attributes {stable_mosaic.version = 11 : i64} {
  func.func @_bilinear_kernel(%arg0: i32, %arg1: i32, %arg2: i32, %arg3: memref<1x8x16xf32, #tpu.memory_space<vmem>>, %arg4: memref<8x64xf32, #tpu.memory_space<vmem>>, %arg5: memref<16x64x128xf32, #tpu.memory_space<vmem>>, %arg6: memref<1x128xf32, #tpu.memory_space<vmem>>, %arg7: memref<8x128xf32, #tpu.memory_space<vmem>>, %arg8: memref<8x128xf32, #tpu.memory_space<vmem>>) attributes {dimension_semantics = [#tpu.dimension_semantics<parallel>, #tpu.dimension_semantics<parallel>, #tpu.dimension_semantics<arbitrary>], iteration_bounds = array<i64: 1, 2, 4>, scalar_prefetch = 0 : i64, scratch_operands = 1 : i64, tpu.core_type = #tpu.core_type<tc>, window_params = [{transform_indices = @transform_0, window_bounds = array<i64: 1, 8, 16>}, {transform_indices = @transform_1, window_bounds = array<i64: 8, 64>}, {transform_indices = @transform_2, window_bounds = array<i64: 16, 64, 128>}, {transform_indices = @transform_3, window_bounds = array<i64: 1, 128>}, {transform_indices = @transform_4, window_bounds = array<i64: 8, 128>}]} {
    %c0_i32 = arith.constant 0 : i32
    %0 = arith.cmpi eq, %arg2, %c0_i32 : i32
    %1 = arith.extui %0 : i1 to i32
    %c0_i32_0 = arith.constant 0 : i32
    %2 = arith.cmpi ne, %1, %c0_i32_0 : i32
    scf.if %2 {
      %cst_59 = arith.constant 0.000000e+00 : f32
      %125 = vector.broadcast %cst_59 : f32 to vector<8x128xf32>
      %c0_60 = arith.constant 0 : index
      %c0_61 = arith.constant 0 : index
      %126 = vector.load %arg8[%c0_60, %c0_61] : memref<8x128xf32, #tpu.memory_space<vmem>>, vector<8x128xf32>
      tpu.vector_store %arg8[%c0_60, %c0_61], %125 {strides = array<i32>} : memref<8x128xf32, #tpu.memory_space<vmem>>, vector<8x128xf32>,
    } else {
    }
    %c0 = arith.constant 0 : index
    %c0_1 = arith.constant 0 : index
    %3 = vector.load %arg4[%c0, %c0_1] : memref<8x64xf32, #tpu.memory_space<vmem>>, vector<8x64xf32>
    %c0_2 = arith.constant 0 : index
    %c0_3 = arith.constant 0 : index
    %c0_4 = arith.constant 0 : index
    %4 = vector.load %arg3[%c0_2, %c0_3, %c0_4] : memref<1x8x16xf32, #tpu.memory_space<vmem>>, vector<1x8x16xf32>
    %5 = vector.shape_cast %4 : vector<1x8x16xf32> to vector<8x16xf32>
    %cst = arith.constant 0.000000e+00 : f32
    %6 = vector.broadcast %cst : f32 to vector<8x128xf32>
    %7 = vector.extract_strided_slice %5 {offsets = [0, 0], sizes = [8, 1], strides = [1, 1]} : vector<8x16xf32> to vector<8x1xf32>
    %c0_5 = arith.constant 0 : index
    %c0_6 = arith.constant 0 : index
    %c0_7 = arith.constant 0 : index
    %8 = vector.load %arg5[%c0_5, %c0_6, %c0_7] : memref<16x64x128xf32, #tpu.memory_space<vmem>>, vector<1x64x128xf32>
    %9 = vector.shape_cast %8 : vector<1x64x128xf32> to vector<64x128xf32>
    %10 = vector.broadcast %7 : vector<8x1xf32> to vector<8x64xf32>
    %11 = arith.mulf %3, %10 : vector<8x64xf32>
    %cst_8 = arith.constant dense<0.000000e+00> : vector<8x128xf32>
    %12 = tpu.matmul %11, %9, %cst_8 {dimension_numbers = #tpu.dot_dimension_numbers<[1], [0], [0], [1], [0, 0, 1, 1], [], []>} : vector<8x64xf32>, vector<64x128xf32>, vector<8x128xf32> -> vector<8x128xf32>
    %13 = arith.addf %6, %12 : vector<8x128xf32>
    %14 = vector.extract_strided_slice %5 {offsets = [0, 1], sizes = [8, 1], strides = [1, 1]} : vector<8x16xf32> to vector<8x1xf32>
    %c1 = arith.constant 1 : index
    %c0_9 = arith.constant 0 : index
    %c0_10 = arith.constant 0 : index
    %15 = vector.load %arg5[%c1, %c0_9, %c0_10] : memref<16x64x128xf32, #tpu.memory_space<vmem>>, vector<1x64x128xf32>
    %16 = vector.shape_cast %15 : vector<1x64x128xf32> to vector<64x128xf32>
    %17 = vector.broadcast %14 : vector<8x1xf32> to vector<8x64xf32>
    %18 = arith.mulf %3, %17 : vector<8x64xf32>
    %cst_11 = arith.constant dense<0.000000e+00> : vector<8x128xf32>
    %19 = tpu.matmul %18, %16, %cst_11 {dimension_numbers = #tpu.dot_dimension_numbers<[1], [0], [0], [1], [0, 0, 1, 1], [], []>} : vector<8x64xf32>, vector<64x128xf32>, vector<8x128xf32> -> vector<8x128xf32>
    %20 = arith.addf %13, %19 : vector<8x128xf32>
    %21 = vector.extract_strided_slice %5 {offsets = [0, 2], sizes = [8, 1], strides = [1, 1]} : vector<8x16xf32> to vector<8x1xf32>
    %c2 = arith.constant 2 : index
    %c0_12 = arith.constant 0 : index
    %c0_13 = arith.constant 0 : index
    %22 = vector.load %arg5[%c2, %c0_12, %c0_13] : memref<16x64x128xf32, #tpu.memory_space<vmem>>, vector<1x64x128xf32>
    %23 = vector.shape_cast %22 : vector<1x64x128xf32> to vector<64x128xf32>
    %24 = vector.broadcast %21 : vector<8x1xf32> to vector<8x64xf32>
    %25 = arith.mulf %3, %24 : vector<8x64xf32>
    %cst_14 = arith.constant dense<0.000000e+00> : vector<8x128xf32>
    %26 = tpu.matmul %25, %23, %cst_14 {dimension_numbers = #tpu.dot_dimension_numbers<[1], [0], [0], [1], [0, 0, 1, 1], [], []>} : vector<8x64xf32>, vector<64x128xf32>, vector<8x128xf32> -> vector<8x128xf32>
    %27 = arith.addf %20, %26 : vector<8x128xf32>
    %28 = vector.extract_strided_slice %5 {offsets = [0, 3], sizes = [8, 1], strides = [1, 1]} : vector<8x16xf32> to vector<8x1xf32>
    %c3 = arith.constant 3 : index
    %c0_15 = arith.constant 0 : index
    %c0_16 = arith.constant 0 : index
    %29 = vector.load %arg5[%c3, %c0_15, %c0_16] : memref<16x64x128xf32, #tpu.memory_space<vmem>>, vector<1x64x128xf32>
    %30 = vector.shape_cast %29 : vector<1x64x128xf32> to vector<64x128xf32>
    %31 = vector.broadcast %28 : vector<8x1xf32> to vector<8x64xf32>
    %32 = arith.mulf %3, %31 : vector<8x64xf32>
    %cst_17 = arith.constant dense<0.000000e+00> : vector<8x128xf32>
    %33 = tpu.matmul %32, %30, %cst_17 {dimension_numbers = #tpu.dot_dimension_numbers<[1], [0], [0], [1], [0, 0, 1, 1], [], []>} : vector<8x64xf32>, vector<64x128xf32>, vector<8x128xf32> -> vector<8x128xf32>
    %34 = arith.addf %27, %33 : vector<8x128xf32>
    %35 = vector.extract_strided_slice %5 {offsets = [0, 4], sizes = [8, 1], strides = [1, 1]} : vector<8x16xf32> to vector<8x1xf32>
    %c4 = arith.constant 4 : index
    %c0_18 = arith.constant 0 : index
    %c0_19 = arith.constant 0 : index
    %36 = vector.load %arg5[%c4, %c0_18, %c0_19] : memref<16x64x128xf32, #tpu.memory_space<vmem>>, vector<1x64x128xf32>
    %37 = vector.shape_cast %36 : vector<1x64x128xf32> to vector<64x128xf32>
    %38 = vector.broadcast %35 : vector<8x1xf32> to vector<8x64xf32>
    %39 = arith.mulf %3, %38 : vector<8x64xf32>
    %cst_20 = arith.constant dense<0.000000e+00> : vector<8x128xf32>
    %40 = tpu.matmul %39, %37, %cst_20 {dimension_numbers = #tpu.dot_dimension_numbers<[1], [0], [0], [1], [0, 0, 1, 1], [], []>} : vector<8x64xf32>, vector<64x128xf32>, vector<8x128xf32> -> vector<8x128xf32>
    %41 = arith.addf %34, %40 : vector<8x128xf32>
    %42 = vector.extract_strided_slice %5 {offsets = [0, 5], sizes = [8, 1], strides = [1, 1]} : vector<8x16xf32> to vector<8x1xf32>
    %c5 = arith.constant 5 : index
    %c0_21 = arith.constant 0 : index
    %c0_22 = arith.constant 0 : index
    %43 = vector.load %arg5[%c5, %c0_21, %c0_22] : memref<16x64x128xf32, #tpu.memory_space<vmem>>, vector<1x64x128xf32>
    %44 = vector.shape_cast %43 : vector<1x64x128xf32> to vector<64x128xf32>
    %45 = vector.broadcast %42 : vector<8x1xf32> to vector<8x64xf32>
    %46 = arith.mulf %3, %45 : vector<8x64xf32>
    %cst_23 = arith.constant dense<0.000000e+00> : vector<8x128xf32>
    %47 = tpu.matmul %46, %44, %cst_23 {dimension_numbers = #tpu.dot_dimension_numbers<[1], [0], [0], [1], [0, 0, 1, 1], [], []>} : vector<8x64xf32>, vector<64x128xf32>, vector<8x128xf32> -> vector<8x128xf32>
    %48 = arith.addf %41, %47 : vector<8x128xf32>
    %49 = vector.extract_strided_slice %5 {offsets = [0, 6], sizes = [8, 1], strides = [1, 1]} : vector<8x16xf32> to vector<8x1xf32>
    %c6 = arith.constant 6 : index
    %c0_24 = arith.constant 0 : index
    %c0_25 = arith.constant 0 : index
    %50 = vector.load %arg5[%c6, %c0_24, %c0_25] : memref<16x64x128xf32, #tpu.memory_space<vmem>>, vector<1x64x128xf32>
    %51 = vector.shape_cast %50 : vector<1x64x128xf32> to vector<64x128xf32>
    %52 = vector.broadcast %49 : vector<8x1xf32> to vector<8x64xf32>
    %53 = arith.mulf %3, %52 : vector<8x64xf32>
    %cst_26 = arith.constant dense<0.000000e+00> : vector<8x128xf32>
    %54 = tpu.matmul %53, %51, %cst_26 {dimension_numbers = #tpu.dot_dimension_numbers<[1], [0], [0], [1], [0, 0, 1, 1], [], []>} : vector<8x64xf32>, vector<64x128xf32>, vector<8x128xf32> -> vector<8x128xf32>
    %55 = arith.addf %48, %54 : vector<8x128xf32>
    %56 = vector.extract_strided_slice %5 {offsets = [0, 7], sizes = [8, 1], strides = [1, 1]} : vector<8x16xf32> to vector<8x1xf32>
    %c7 = arith.constant 7 : index
    %c0_27 = arith.constant 0 : index
    %c0_28 = arith.constant 0 : index
    %57 = vector.load %arg5[%c7, %c0_27, %c0_28] : memref<16x64x128xf32, #tpu.memory_space<vmem>>, vector<1x64x128xf32>
    %58 = vector.shape_cast %57 : vector<1x64x128xf32> to vector<64x128xf32>
    %59 = vector.broadcast %56 : vector<8x1xf32> to vector<8x64xf32>
    %60 = arith.mulf %3, %59 : vector<8x64xf32>
    %cst_29 = arith.constant dense<0.000000e+00> : vector<8x128xf32>
    %61 = tpu.matmul %60, %58, %cst_29 {dimension_numbers = #tpu.dot_dimension_numbers<[1], [0], [0], [1], [0, 0, 1, 1], [], []>} : vector<8x64xf32>, vector<64x128xf32>, vector<8x128xf32> -> vector<8x128xf32>
    %62 = arith.addf %55, %61 : vector<8x128xf32>
    %63 = vector.extract_strided_slice %5 {offsets = [0, 8], sizes = [8, 1], strides = [1, 1]} : vector<8x16xf32> to vector<8x1xf32>
    %c8 = arith.constant 8 : index
    %c0_30 = arith.constant 0 : index
    %c0_31 = arith.constant 0 : index
    %64 = vector.load %arg5[%c8, %c0_30, %c0_31] : memref<16x64x128xf32, #tpu.memory_space<vmem>>, vector<1x64x128xf32>
    %65 = vector.shape_cast %64 : vector<1x64x128xf32> to vector<64x128xf32>
    %66 = vector.broadcast %63 : vector<8x1xf32> to vector<8x64xf32>
    %67 = arith.mulf %3, %66 : vector<8x64xf32>
    %cst_32 = arith.constant dense<0.000000e+00> : vector<8x128xf32>
    %68 = tpu.matmul %67, %65, %cst_32 {dimension_numbers = #tpu.dot_dimension_numbers<[1], [0], [0], [1], [0, 0, 1, 1], [], []>} : vector<8x64xf32>, vector<64x128xf32>, vector<8x128xf32> -> vector<8x128xf32>
    %69 = arith.addf %62, %68 : vector<8x128xf32>
    %70 = vector.extract_strided_slice %5 {offsets = [0, 9], sizes = [8, 1], strides = [1, 1]} : vector<8x16xf32> to vector<8x1xf32>
    %c9 = arith.constant 9 : index
    %c0_33 = arith.constant 0 : index
    %c0_34 = arith.constant 0 : index
    %71 = vector.load %arg5[%c9, %c0_33, %c0_34] : memref<16x64x128xf32, #tpu.memory_space<vmem>>, vector<1x64x128xf32>
    %72 = vector.shape_cast %71 : vector<1x64x128xf32> to vector<64x128xf32>
    %73 = vector.broadcast %70 : vector<8x1xf32> to vector<8x64xf32>
    %74 = arith.mulf %3, %73 : vector<8x64xf32>
    %cst_35 = arith.constant dense<0.000000e+00> : vector<8x128xf32>
    %75 = tpu.matmul %74, %72, %cst_35 {dimension_numbers = #tpu.dot_dimension_numbers<[1], [0], [0], [1], [0, 0, 1, 1], [], []>} : vector<8x64xf32>, vector<64x128xf32>, vector<8x128xf32> -> vector<8x128xf32>
    %76 = arith.addf %69, %75 : vector<8x128xf32>
    %77 = vector.extract_strided_slice %5 {offsets = [0, 10], sizes = [8, 1], strides = [1, 1]} : vector<8x16xf32> to vector<8x1xf32>
    %c10 = arith.constant 10 : index
    %c0_36 = arith.constant 0 : index
    %c0_37 = arith.constant 0 : index
    %78 = vector.load %arg5[%c10, %c0_36, %c0_37] : memref<16x64x128xf32, #tpu.memory_space<vmem>>, vector<1x64x128xf32>
    %79 = vector.shape_cast %78 : vector<1x64x128xf32> to vector<64x128xf32>
    %80 = vector.broadcast %77 : vector<8x1xf32> to vector<8x64xf32>
    %81 = arith.mulf %3, %80 : vector<8x64xf32>
    %cst_38 = arith.constant dense<0.000000e+00> : vector<8x128xf32>
    %82 = tpu.matmul %81, %79, %cst_38 {dimension_numbers = #tpu.dot_dimension_numbers<[1], [0], [0], [1], [0, 0, 1, 1], [], []>} : vector<8x64xf32>, vector<64x128xf32>, vector<8x128xf32> -> vector<8x128xf32>
    %83 = arith.addf %76, %82 : vector<8x128xf32>
    %84 = vector.extract_strided_slice %5 {offsets = [0, 11], sizes = [8, 1], strides = [1, 1]} : vector<8x16xf32> to vector<8x1xf32>
    %c11 = arith.constant 11 : index
    %c0_39 = arith.constant 0 : index
    %c0_40 = arith.constant 0 : index
    %85 = vector.load %arg5[%c11, %c0_39, %c0_40] : memref<16x64x128xf32, #tpu.memory_space<vmem>>, vector<1x64x128xf32>
    %86 = vector.shape_cast %85 : vector<1x64x128xf32> to vector<64x128xf32>
    %87 = vector.broadcast %84 : vector<8x1xf32> to vector<8x64xf32>
    %88 = arith.mulf %3, %87 : vector<8x64xf32>
    %cst_41 = arith.constant dense<0.000000e+00> : vector<8x128xf32>
    %89 = tpu.matmul %88, %86, %cst_41 {dimension_numbers = #tpu.dot_dimension_numbers<[1], [0], [0], [1], [0, 0, 1, 1], [], []>} : vector<8x64xf32>, vector<64x128xf32>, vector<8x128xf32> -> vector<8x128xf32>
    %90 = arith.addf %83, %89 : vector<8x128xf32>
    %91 = vector.extract_strided_slice %5 {offsets = [0, 12], sizes = [8, 1], strides = [1, 1]} : vector<8x16xf32> to vector<8x1xf32>
    %c12 = arith.constant 12 : index
    %c0_42 = arith.constant 0 : index
    %c0_43 = arith.constant 0 : index
    %92 = vector.load %arg5[%c12, %c0_42, %c0_43] : memref<16x64x128xf32, #tpu.memory_space<vmem>>, vector<1x64x128xf32>
    %93 = vector.shape_cast %92 : vector<1x64x128xf32> to vector<64x128xf32>
    %94 = vector.broadcast %91 : vector<8x1xf32> to vector<8x64xf32>
    %95 = arith.mulf %3, %94 : vector<8x64xf32>
    %cst_44 = arith.constant dense<0.000000e+00> : vector<8x128xf32>
    %96 = tpu.matmul %95, %93, %cst_44 {dimension_numbers = #tpu.dot_dimension_numbers<[1], [0], [0], [1], [0, 0, 1, 1], [], []>} : vector<8x64xf32>, vector<64x128xf32>, vector<8x128xf32> -> vector<8x128xf32>
    %97 = arith.addf %90, %96 : vector<8x128xf32>
    %98 = vector.extract_strided_slice %5 {offsets = [0, 13], sizes = [8, 1], strides = [1, 1]} : vector<8x16xf32> to vector<8x1xf32>
    %c13 = arith.constant 13 : index
    %c0_45 = arith.constant 0 : index
    %c0_46 = arith.constant 0 : index
    %99 = vector.load %arg5[%c13, %c0_45, %c0_46] : memref<16x64x128xf32, #tpu.memory_space<vmem>>, vector<1x64x128xf32>
    %100 = vector.shape_cast %99 : vector<1x64x128xf32> to vector<64x128xf32>
    %101 = vector.broadcast %98 : vector<8x1xf32> to vector<8x64xf32>
    %102 = arith.mulf %3, %101 : vector<8x64xf32>
    %cst_47 = arith.constant dense<0.000000e+00> : vector<8x128xf32>
    %103 = tpu.matmul %102, %100, %cst_47 {dimension_numbers = #tpu.dot_dimension_numbers<[1], [0], [0], [1], [0, 0, 1, 1], [], []>} : vector<8x64xf32>, vector<64x128xf32>, vector<8x128xf32> -> vector<8x128xf32>
    %104 = arith.addf %97, %103 : vector<8x128xf32>
    %105 = vector.extract_strided_slice %5 {offsets = [0, 14], sizes = [8, 1], strides = [1, 1]} : vector<8x16xf32> to vector<8x1xf32>
    %c14 = arith.constant 14 : index
    %c0_48 = arith.constant 0 : index
    %c0_49 = arith.constant 0 : index
    %106 = vector.load %arg5[%c14, %c0_48, %c0_49] : memref<16x64x128xf32, #tpu.memory_space<vmem>>, vector<1x64x128xf32>
    %107 = vector.shape_cast %106 : vector<1x64x128xf32> to vector<64x128xf32>
    %108 = vector.broadcast %105 : vector<8x1xf32> to vector<8x64xf32>
    %109 = arith.mulf %3, %108 : vector<8x64xf32>
    %cst_50 = arith.constant dense<0.000000e+00> : vector<8x128xf32>
    %110 = tpu.matmul %109, %107, %cst_50 {dimension_numbers = #tpu.dot_dimension_numbers<[1], [0], [0], [1], [0, 0, 1, 1], [], []>} : vector<8x64xf32>, vector<64x128xf32>, vector<8x128xf32> -> vector<8x128xf32>
    %111 = arith.addf %104, %110 : vector<8x128xf32>
    %112 = vector.extract_strided_slice %5 {offsets = [0, 15], sizes = [8, 1], strides = [1, 1]} : vector<8x16xf32> to vector<8x1xf32>
    %c15 = arith.constant 15 : index
    %c0_51 = arith.constant 0 : index
    %c0_52 = arith.constant 0 : index
    %113 = vector.load %arg5[%c15, %c0_51, %c0_52] : memref<16x64x128xf32, #tpu.memory_space<vmem>>, vector<1x64x128xf32>
    %114 = vector.shape_cast %113 : vector<1x64x128xf32> to vector<64x128xf32>
    %115 = vector.broadcast %112 : vector<8x1xf32> to vector<8x64xf32>
    %116 = arith.mulf %3, %115 : vector<8x64xf32>
    %cst_53 = arith.constant dense<0.000000e+00> : vector<8x128xf32>
    %117 = tpu.matmul %116, %114, %cst_53 {dimension_numbers = #tpu.dot_dimension_numbers<[1], [0], [0], [1], [0, 0, 1, 1], [], []>} : vector<8x64xf32>, vector<64x128xf32>, vector<8x128xf32> -> vector<8x128xf32>
    %118 = arith.addf %111, %117 : vector<8x128xf32>
    %c0_54 = arith.constant 0 : index
    %c0_55 = arith.constant 0 : index
    %119 = vector.load %arg8[%c0_54, %c0_55] : memref<8x128xf32, #tpu.memory_space<vmem>>, vector<8x128xf32>
    %120 = arith.addf %119, %118 : vector<8x128xf32>
    %c0_56 = arith.constant 0 : index
    %c0_57 = arith.constant 0 : index
    %121 = vector.load %arg8[%c0_56, %c0_57] : memref<8x128xf32, #tpu.memory_space<vmem>>, vector<8x128xf32>
    tpu.vector_store %arg8[%c0_56, %c0_57], %120 {strides = array<i32>} : memref<8x128xf32, #tpu.memory_space<vmem>>, vector<8x128xf32>,
    %c3_i32 = arith.constant 3 : i32
    %122 = arith.cmpi eq, %arg2, %c3_i32 : i32
    %123 = arith.extui %122 : i1 to i32
    %c0_i32_58 = arith.constant 0 : i32
    %124 = arith.cmpi ne, %123, %c0_i32_58 : i32
    scf.if %124 {
      %c0_59 = arith.constant 0 : index
      %c0_60 = arith.constant 0 : index
      %125 = vector.load %arg8[%c0_59, %c0_60] : memref<8x128xf32, #tpu.memory_space<vmem>>, vector<8x128xf32>
      %c0_61 = arith.constant 0 : index
      %c0_62 = arith.constant 0 : index
      %126 = vector.load %arg6[%c0_61, %c0_62] : memref<1x128xf32, #tpu.memory_space<vmem>>, vector<1x128xf32>
      %127 = vector.broadcast %126 : vector<1x128xf32> to vector<8x128xf32>
      %128 = arith.addf %125, %127 : vector<8x128xf32>
      %c0_63 = arith.constant 0 : index
      %c0_64 = arith.constant 0 : index
      %129 = vector.load %arg7[%c0_63, %c0_64] : memref<8x128xf32, #tpu.memory_space<vmem>>, vector<8x128xf32>
      tpu.vector_store %arg7[%c0_63, %c0_64], %128 {strides = array<i32>} : memref<8x128xf32, #tpu.memory_space<vmem>>, vector<8x128xf32>,
    } else {
    }
    return
  }
  func.func @transform_0(%arg0: i32, %arg1: i32, %arg2: i32) -> (i32, i32, i32) {
    %c0_i32 = arith.constant 0 : i32
    %c0_i32_0 = arith.constant 0 : i32
    return %arg2, %arg0, %c0_i32 : i32, i32, i32
  }
  func.func @transform_1(%arg0: i32, %arg1: i32, %arg2: i32) -> (i32, i32) {
    %c0_i32 = arith.constant 0 : i32
    %c0_i32_0 = arith.constant 0 : i32
    return %arg0, %c0_i32 : i32, i32
  }
  func.func @transform_2(%arg0: i32, %arg1: i32, %arg2: i32) -> (i32, i32, i32) {
    %c0_i32 = arith.constant 0 : i32
    %c0_i32_0 = arith.constant 0 : i32
    return %arg2, %c0_i32, %arg1 : i32, i32, i32
  }
  func.func @transform_3(%arg0: i32, %arg1: i32, %arg2: i32) -> (i32, i32) {
    %c0_i32 = arith.constant 0 : i32
    %c0_i32_0 = arith.constant 0 : i32
    return %c0_i32, %arg1 : i32, i32
  }
  func.func @transform_4(%arg0: i32, %arg1: i32, %arg2: i32) -> (i32, i32) {
    %c0_i32 = arith.constant 0 : i32
    return %arg0, %arg1 : i32, i32
  }
}

</mosaic_0001>

<bundles_post_ra>
// kernel: tpu_custom_call.1
= control target key start
LH: loop header
LB: loop body
LE: loop exit
PB: predicated region body
PF: predicated region fallthrough
CT: control target
= control target key end

     0   :  { %s3956_s0 = inlined_call_operand.hbm [shape: f32[4,8,16], index: 0, kind: input, shape index: {}]   ;;  %s3957_s1 = inlined_call_operand.hbm [shape: f32[8,64], index: 1, kind: input, shape index: {}]   ;;  %s3958_s2 = inlined_call_operand.hbm [shape: f32[64,64,256], index: 2, kind: input, shape index: {}]   ;;  %s3959_s3 = inlined_call_operand.hbm [shape: f32[1,256], index: 3, kind: input, shape index: {}]   ;;  %s3960_s4 = inlined_call_operand.hbm [shape: f32[8,256], index: 4, kind: output, shape index: {}]  }
   0x1   :  { %3973 = sst [smem:[#allocation22_spill]] %s3956_s0 }
   0x2   :  { %3974 = sst [smem:[#allocation23_spill]] %s3957_s1 }
   0x3   :  { %3975 = sst [smem:[#allocation24_spill]] %s3960_s4 }
   0x4   :  { %9 = vsyncpa [#allocation4], 0 }
   0x5   :  { %11 = vsyncpa [#allocation4 + $0x1], 0 }
   0x6   :  { %12 = vsyncpa [#allocation7], 0 }
   0x7   :  { %13 = vsyncpa [#allocation5], 0 }
   0x8   :  { %15 = vsyncpa [#allocation5 + $0x1], 0  ;;  %s3234_s15 = smov 0   ;;  %s3236_s16 = smov 0  }
   0x9   :  { %s3238_s17 = smov 0   ;;  %s3240_s18 = smov 0  }
   0xa   :  { %s3242_s19 = smov 0   ;;  %s3244_s20 = smov 0  }
   0xb   :  { %s3246_s21 = smov 0   ;;  %s3248_s22 = smov 0  }
   0xc   :  { %s3250_s23 = smov 0   ;;  %s3252_s24 = smov 0  }
   0xd   :  { %s3254_s25 = smov 0   ;;  %s3256_s26 = smov 0  }
   0xe   :  { %s3258_s27 = smov 0   ;;  %s3260_s28 = smov 0  }
   0xf LB: > { %3976 = sst [smem:[#allocation16_spill]] %s3159_s23  ;;  %s33_s29 = sadd.s32 1, %s3171_s26  ;;  %s3179_s28 = sphi %s3260_s28, %s21_s28   ;;  %s3175_s27 = sphi %s3258_s27, %s4030_s27   ;;  %s3171_s26 = sphi %s3256_s26, %s4017_s26   ;;  %s3167_s25 = sphi %s3254_s25, %s4029_s25   ;;  %s3163_s24 = sphi %s3252_s24, %s4028_s24   ;;  %s3159_s23 = sphi %s3250_s23, %s4027_s23   ;;  %s3155_s22 = sphi %s3248_s22, %s4026_s22   ;;  %s3151_s21 = sphi %s3246_s21, %s4025_s21   ;;  %s3147_s20 = sphi %s3244_s20, %s4024_s20   ;;  %s3143_s19 = sphi %s3242_s19, %s4023_s19   ;;  %s3139_s18 = sphi %s3240_s18, %s4022_s18   ;;  %s3135_s17 = sphi %s3238_s17, %s4021_s17   ;;  %s3131_s16 = sphi %s3236_s16, %s4020_s16   ;;  %s3127_s15 = sphi %s3234_s15, %s4019_s15  }
  0x10   : > { %3977 = sst [smem:[#allocation17_spill]] %s3167_s25  ;;  %s36_s30 = sadd.s32 1, %s3175_s27 }
  0x11   : > { %3978 = sst [smem:[#allocation18_spill]] %s3171_s26  ;;  %p34_p0 = scmp.ge.s32.totalorder %s33_s29, 4 }
  0x12   : > { %s49_s5 = sadd.s32 1, %s3159_s23  ;;  %p56_p1 = scmp.ne.s32.totalorder %s3159_s23, %s3155_s22 }
  0x13   : > { %p3967_p2 = scmp.eq.s32.totalorder %s3179_s28, 0  ;;  %s4032_s29 = smov (%p34_p0, %s33_s29), 0 }
  0x14   : > { %3979 = sst [smem:[#allocation19_spill]] %s4032_s29  ;;  %s4034_s30 = smov (!%p34_p0, %s36_s30), %s3175_s27 }
  0x15   : > { %s44_s6 = ssub.s32 %s3171_s26, %s4032_s29  ;;  %p3317_p3 = por %p3967_p2, %p56_p1 }
  0x16   : > { %p38_p4 = scmp.ge.s32.totalorder %s4034_s30, 2  ;;  %p47_p5 = scmp.eq.s32.totalorder %s44_s6, 0 }
  0x17   : > { %s103_s8 = sadd.s32 1, %s3147_s20  ;;  %p110_p7 = scmp.ne.s32.totalorder %s3147_s20, %s3143_s19 }
  0x18   : > { %s4036_s30 = smov (%p38_p4, %s4034_s30), 0  ;;  %p3966_p11 = scmp.lt.s32.totalorder %s3179_s28, 8 }
  0x19   : > { %3981 = sst [smem:[#allocation20_spill]] %s4036_s30  ;;  %s3331_s10 = ssub.s32 %s3175_s27, %s4036_s30 }
  0x1a   : > { %s3327_s9 = scalar_select %p47_p5, %s3159_s23, %s49_s5  }
  0x1b   : > { %s100_s11 = sor.u32 %s3331_s10, %s44_s6  ;;  %p3339_p10 = por %p110_p7, %p3967_p2 }
  0x1c   : > { %3982 = sst [smem:[#allocation21_spill]] %s3327_s9  ;;  %p101_p9 = scmp.eq.s32.totalorder %s100_s11, 0 }
  0x1d   : > { %s207_s14 = sand.u32 1, %s3179_s28   ;;  %s209_s5 = sand.u32 1, %s3159_s23  }
  0x1e   : > { %s3345_s13 = scalar_select %p101_p9, %s3147_s20, %s103_s8  }
  0x1f   : > { %s1920_s30 = sshll.u32 %s209_s5, 3  ;;  %s1921_s29 = sshll.u32 %s3171_s26, 7 }
  0x20   : > { %s3984_s0 = sld [smem:[#allocation22_spill]]  ;;  %s211_s11 = scalar_lea.vmem [#allocation3], %s1920_s30 }
  0x21   : > { %s219_s25 = sshll.u32 %s211_s11, 4  ;;  %p3361_p12 = pnand %p3966_p11, %p3317_p3  ;;  %s3355_s25 = int_to_ptr.vmem [resolvable:$true] %s219_s25 }
  0x22   : > { %s2075_s5 = sshll.u32 %s3171_s26, 8  ;;  %p3370_p13 = pnand %p3966_p11, %p3339_p10 }
  0x23   : > { %s3377_s30 = scalar_lea.sflag [#allocation4], %s207_s14  ;;  %p2905_p1 = pneg %p3361_p12 }
  0x26   : > { %s3353_s6 = scalar_lea.hbm %s3984_s0, %s1921_s29  ;;  %s3375_s29 = sadd.s32 %s3175_s27, %s2075_s5 }
  0x27   : > { %s2903_s9 = scalar_lea.hbm %s3353_s6, 128  ;;  %s2908_s12 = scalar_lea.hbm %s3984_s0, 512 }
  0x28   : > { %p2904_p0 = scmp.ne.s32.totalorder %s3353_s6, %s2903_s9  ;;  %p2909_p5 = scmp.lt.u32.totalorder %s3353_s6, %s3984_s0 }
  0x29   : > { %p2910_p7 = scmp.lt.u32.totalorder %s2908_s12, %s2903_s9  ;;  %p2912_p10 = scmp.lt.u32.totalorder %s2903_s9, %s3353_s6 }
  0x2a   : > { %p2906_p3 = pnand %p2905_p1, %p2904_p0 }
  0x2b   : > { %p2911_p9 = por %p2910_p7, %p2909_p5 }
  0x2c   : > { %p2907_p4 = pneg %p2906_p3 }
  0x2d   : > { %p2913_p11 = por %p2912_p10, %p2911_p9 }
  0x2f   : > { %p2914_p2 = pnand %p2913_p11, %p2907_p4 }
  0x31   : > { %2917 = shalt.err (!%p2914_p2)
}
  0x32   : > { %s2918_s14 = scalar_lea.vmem %s3355_s25, 128  ;;  %s3181_s5 = smov [#allocation3]  }
  0x33   : > { %p2919_p0 = scmp.ne.s32.totalorder %s3355_s25, %s2918_s14  ;;  %s2923_s7 = sshll.u32 %s3181_s5, 4  ;;  %s2924_s7 = int_to_ptr.vmem [resolvable:$false] %s2923_s7 }
  0x34   : > { %s2925_s23 = scalar_lea.vmem %s2924_s7, 256  ;;  %p2926_p6 = scmp.lt.s32.totalorder %s3355_s25, %s2924_s7 }
  0x35   : > { %p2921_p3 = pnand %p2919_p0, %p2905_p1  ;;  %p2927_p5 = scmp.lt.s32.totalorder %s2925_s23, %s2918_s14 }
  0x37   : > { %p2922_p8 = pneg %p2921_p3  ;;  %p2928_p7 = por %p2927_p5, %p2926_p6 }
  0x39   : > { %p2929_p9 = pnand %p2928_p7, %p2922_p8 }
  0x3b   : > { %2932 = shalt.err (!%p2929_p9)
}
  0x3c   : > { %2735 = dma.hbm_to_vmem [thread:$0]  (!%p3361_p12), %s3353_s6, 128, %s3355_s25, %s3377_s30  }
  0x3d   : > { %s1925_s26 = sshll.u32 %s3375_s29, 7  ;;  %s228_s14 = sand.u32 1, %s3147_s20  }
  0x3e   : > { %s3409_s12 = scalar_lea.hbm %s3958_s2, %s1925_s26  ;;  %s1922_s8 = sshll.u32 %s228_s14, 10 }
  0x3f   : > { %s230_s5 = scalar_lea.vmem [#allocation8], %s1922_s8  ;;  %s2933_s23 = scalar_lea.hbm %s3409_s12, 16384 }
  0x40   : > { %s239_s7 = sshll.u32 %s230_s5, 4  ;;  %p2934_p2 = scmp.ne.s32.totalorder %s3409_s12, %s2933_s23  ;;  %s3412_s7 = int_to_ptr.vmem [resolvable:$true] %s239_s7 }
  0x41   : > { %p2935_p6 = pneg %p3370_p13  ;;  %s2938_s29 = scalar_lea.hbm %s3958_s2, 131072 }
  0x42   : > { %p2939_p12 = scmp.lt.u32.totalorder %s3409_s12, %s3958_s2  ;;  %p2940_p1 = scmp.lt.u32.totalorder %s2938_s29, %s2933_s23 }
  0x43   : > { %p2936_p8 = pnand %p2935_p6, %p2934_p2  ;;  %p2942_p10 = scmp.lt.u32.totalorder %s2933_s23, %s3409_s12 }
  0x44   : > { %p2941_p4 = por %p2940_p1, %p2939_p12 }
  0x45   : > { %p2937_p11 = pneg %p2936_p8 }
  0x46   : > { %p2943_p0 = por %p2942_p10, %p2941_p4 }
  0x48   : > { %p2944_p3 = pnand %p2943_p0, %p2937_p11 }
  0x4a   : > { %2947 = shalt.err (!%p2944_p3)
}
  0x4b   : > { %s2948_s11 = scalar_lea.vmem %s3412_s7, 16384  ;;  %s3182_s14 = smov [#allocation8]  }
  0x4c   : > { %p2949_p5 = scmp.ne.s32.totalorder %s3412_s7, %s2948_s11  ;;  %s2953_s8 = sshll.u32 %s3182_s14, 4  ;;  %s2954_s8 = int_to_ptr.vmem [resolvable:$false] %s2953_s8 }
  0x4d   : > { %s2955_s5 = scalar_lea.vmem %s2954_s8, 32768  ;;  %p2956_p2 = scmp.lt.s32.totalorder %s3412_s7, %s2954_s8 }
  0x4e   : > { %p2951_p7 = pnand %p2949_p5, %p2935_p6  ;;  %p2957_p8 = scmp.lt.s32.totalorder %s2955_s5, %s2948_s11 }
  0x50   : > { %p2952_p9 = pneg %p2951_p7  ;;  %p2958_p12 = por %p2957_p8, %p2956_p2 }
  0x52   : > { %p2959_p1 = pnand %p2958_p12, %p2952_p9 }
  0x54   : > { %2962 = shalt.err (!%p2959_p1)
}
  0x55   : > { %s3183_s23 = smov 256   ;;  %s3184_s25 = smov 128  }
  0x56   : > { %s3185_s6 = smov 8   ;;  %s3441_s29 = sadd.s32 4294967295, %s3179_s28  }
  0x57   : > { %2738 = dma.hbm_to_vmem [thread:$0]  (!%p3370_p13), %s3409_s12, 16384, %s3412_s7, %s3377_s30, %s3183_s23, %s3184_s25, %s3185_s6  }
  0x58   : > { %p3968_p6 = scmp.eq.s32.totalorder %s3441_s29, 0  ;;  %p116_p11 = scmp.ne.s32.totalorder %s3143_s19, %s3139_s18 }
  0x59   : > { %p1917_p10 = scmp.ge.s32.totalorder %s3179_s28, 1  ;;  %p3987_p0 = scmp.ne.s32.totalorder %s3155_s22, %s3151_s21 }
  0x5a   : > { %p3459_p13 = por %p116_p11, %p3968_p6  ;;  %p181_p5 = scmp.lt.s32.totalorder %s3179_s28, 9 }
  0x5b   : > { %p3453_p3 = por %p3968_p6, %p3987_p0  ;;  %s3186_s18 = smov [#allocation6]  }
  0x5c   : > { %s3989_s12 = scalar_select %p3459_p13, 1, 0 }
  0x5d   : > { %s3988_s4 = scalar_select %p3453_p3, 1, 0 }
  0x5e   : > { %p3464_p7 = pnand %p1917_p10, %p181_p5  ;;  %s196_s26 = sshll.u32 %s3186_s18, 4  ;;  %s197_s26 = int_to_ptr.vmem [resolvable:$true] %s196_s26 }
  0x5f   : > { %s1916_s9 = sadd.s32 4294967294, %s3179_s28   ;;  %s129_s11 = sadd.s32 1, %s3135_s17 }
  0x60   : > { %s3990_s7 = scalar_select %p3464_p7, 1, 0 }
  0x61   : > { %p2728_p9 = pneg %p3464_p7  ;;  %s3992_s1 = sld [smem:[#allocation23_spill]] }
  0x63   : > { %p3472_p2 = pnand %p2728_p9, %p3968_p6 }
  0x65   : > { %p2965_p1 = pneg %p3472_p2 }
  0x67   : > { %s2963_s5 = scalar_lea.hbm %s3992_s1, 128 }
  0x68   : > { %p2964_p12 = scmp.ne.s32.totalorder %s3992_s1, %s2963_s5  ;;  %p2970_p0 = scmp.lt.u32.totalorder %s2963_s5, %s3992_s1 }
  0x6a   : > { %p2966_p11 = pnand %p2965_p1, %p2964_p12 }
  0x6c   : > { %p2967_p10 = pneg %p2966_p11 }
  0x6e   : > { %p2972_p5 = pnand %p2970_p0, %p2967_p10 }
  0x70   : > { %2975 = shalt.err (!%p2972_p5)
}
  0x71   : > { %s2976_s0 = scalar_lea.vmem %s197_s26, 128  ;;  %p2984_p8 = scmp.lt.s32.totalorder %s197_s26, %s197_s26 }
  0x72   : > { %p2977_p9 = scmp.ne.s32.totalorder %s197_s26, %s2976_s0  ;;  %p2985_p13 = scmp.lt.s32.totalorder %s2976_s0, %s2976_s0 }
  0x74   : > { %p2979_p6 = pnand %p2977_p9, %p2965_p1  ;;  %p2986_p3 = por %p2985_p13, %p2984_p8 }
  0x76   : > { %p2980_p4 = pneg %p2979_p6 }
  0x78   : > { %p2987_p7 = pnand %p2986_p3, %p2980_p4 }
  0x7a   : > { %2990 = shalt.err (!%p2987_p7)
}
  0x7b   : > { %2731 = dma.hbm_to_vmem [thread:$0]  (!%p3472_p2), %s3992_s1, 128, %s197_s26, [#allocation7]  }
  0x7c   : > { %p3993_p6 = scmp.eq.s32.totalorder %s3331_s10, 0  ;;  %p3994_p4 = scmp.eq.s32.totalorder %s3179_s28, 0 }
  0x7d   : > { %p3995_p3 = scmp.ne.s32.totalorder %s3135_s17, %s3131_s16  ;;  %p142_p7 = scmp.ne.s32.totalorder %s3131_s16, %s3127_s15 }
  0x7e   : > { %s3499_s0 = scalar_select %p3993_p6, %s3135_s17, %s129_s11  }
  0x7f   : > { %p138_p13 = por %p3995_p3, %p3994_p4  ;;  %p3996_p8 = pmov %p3995_p3 }
  0x80   : > { %p3997_p12 = scmp.eq.s32.totalorder %s3441_s29, 7  ;;  %p174_p11 = scmp.eq.s32.totalorder %s1916_s9, 7 }
  0x81   : > { %p3999_p10 = scmp.eq.s32.totalorder %s3441_s29, 0  ;;  %s251_s26 = sand.u32 1, %s3135_s17  }
  0x82   : > { %p3513_p1 = por %p3997_p12, %p3996_p8  ;;  %p3524_p2 = por %p174_p11, %p142_p7 }
  0x83   : > { %p3519_p0 = por %p142_p7, %p3999_p10  ;;  %s1926_s11 = sshll.u32 %s3175_s27, 4 }
  0x84   : > { %s3998_s21 = scalar_select %p3513_p1, 1, 0 }
  0x85   : > { %s4001_s10 = scalar_select %p3524_p2, 1, 0 }
  0x86   : > { %s252_s23 = scalar_lea.vmem [#allocation9], %s251_s26  ;;  %s3532_s14 = scalar_lea.hbm %s3959_s3, %s1926_s11 }
  0x87   : > { %s259_s25 = sshll.u32 %s252_s23, 4  ;;  %p4002_p5 = scmp.lt.s32.totalorder %s3179_s28, 8  ;;  %s3534_s25 = int_to_ptr.vmem [resolvable:$true] %s259_s25 }
  0x88   : > { %s2991_s8 = scalar_lea.hbm %s3532_s14, 16  ;;  %s2996_s23 = scalar_lea.hbm %s3959_s3, 32 }
  0x89   : > { %p3538_p9 = pnand %p4002_p5, %p138_p13  ;;  %p2992_p6 = scmp.ne.s32.totalorder %s3532_s14, %s2991_s8 }
  0x8a   : > { %p2997_p13 = scmp.lt.u32.totalorder %s3532_s14, %s3959_s3  ;;  %p2998_p8 = scmp.lt.u32.totalorder %s2996_s23, %s2991_s8 }
  0x8b   : > { %p2993_p4 = pneg %p3538_p9  ;;  %p3000_p11 = scmp.lt.u32.totalorder %s2991_s8, %s3532_s14 }
  0x8c   : > { %p2999_p12 = por %p2998_p8, %p2997_p13 }
  0x8d   : > { %p2994_p3 = pnand %p2993_p4, %p2992_p6 }
  0x8e   : > { %p3001_p10 = por %p3000_p11, %p2999_p12 }
  0x8f   : > { %p2995_p7 = pneg %p2994_p3 }
  0x91   : > { %p3002_p5 = pnand %p3001_p10, %p2995_p7 }
  0x93   : > { %3005 = shalt.err (!%p3002_p5)
}
  0x94   : > { %s3006_s1 = scalar_lea.vmem %s3534_s25, 16  ;;  %s3187_s26 = smov [#allocation9]  }
  0x95   : > { %p3007_p6 = scmp.ne.s32.totalorder %s3534_s25, %s3006_s1  ;;  %s3011_s11 = sshll.u32 %s3187_s26, 4  ;;  %s3012_s11 = int_to_ptr.vmem [resolvable:$false] %s3011_s11 }
  0x96   : > { %s3013_s6 = scalar_lea.vmem %s3012_s11, 32  ;;  %p3014_p1 = scmp.lt.s32.totalorder %s3534_s25, %s3012_s11 }
  0x97   : > { %p3009_p3 = pnand %p3007_p6, %p2993_p4  ;;  %p3015_p13 = scmp.lt.s32.totalorder %s3013_s6, %s3006_s1 }
  0x99   : > { %p3010_p2 = pneg %p3009_p3  ;;  %p3016_p8 = por %p3015_p13, %p3014_p1 }
  0x9b   : > { %p3017_p12 = pnand %p3016_p8, %p3010_p2 }
  0x9d   : > { %3020 = shalt.err (!%p3017_p12)
}
  0x9e   : > { %2741 = dma.hbm_to_vmem [thread:$0]  (!%p3538_p9), %s3532_s14, 16, %s3534_s25, %s3377_s30  }
  0x9f   : > { %p4004_p7 = scmp.ne.s32.totalorder %s3990_s7, 0 }
  0xa0   : > { %s270_s8 = sand.u32 (!%p4004_p7), 1, %s3441_s29   ;;  %s272_s23 = sand.u32 (!%p4004_p7), 1, %s3155_s22  }
  0xa1   : > { %268 = sbr.rel (%p4004_p7) target bundleno = 691 (0x2b3), region = 36  ;;  %s1928_s18 = sshll.u32 (!%p4004_p7), %s272_s23, 3 }
  0xa2   : > { %s271_s26 = scalar_lea.sflag (!%p4004_p7), [#allocation4], %s270_s8  ;;  %s274_s1 = scalar_lea.vmem (!%p4004_p7), [#allocation3], %s1928_s18 }
  0xa3   : > { %p4005_p1 = scmp.ne.s32.totalorder (!%p4004_p7), %s3988_s4, 0 }
  0xa8   : > { %3106 = dma.done.wait (%p4005_p1), %s271_s26, 128  }
  0xa9   : > { %3108 = vsyncadd (%p4005_p1), %s271_s26, 4294967168  ;;  %p4006_p2 = scmp.eq.s32.totalorder %s3441_s29, 0 }
  0xab   : > { %3110 = dma.done.wait (%p4006_p2), [#allocation7], 128   ;;  %p4007_p9 = pmov %p4006_p2 }
  0xac   : > { %s285_s30 = sand.u32 1, %s3143_s19   ;;  %p4008_p4 = scmp.ne.s32.totalorder %s3989_s12, 0 }
  0xad   : > { %3112 = vsyncadd (%p4007_p9), [#allocation7], 4294967168  ;;  %s1930_s7 = sshll.u32 %s285_s30, 10 }
  0xae   : > { %s3581_s25 = scalar_lea.vmem [#allocation8], %s1930_s7 }
  0xaf   : > { %3114 = dma.done.wait (%p4008_p4), %s271_s26, 16384  }
  0xb0   : > { %3116 = vsyncadd (%p4008_p4), %s271_s26, 4294950912  ;;  %s3588_s4 = sand.u32 1, %s3131_s16  }
  0xb1   : > { %s295_s14 = scalar_lea.vmem [#allocation9], %s3588_s4 }
  0xb2   : > { %3118 = dma.done.wait (%p3519_p0), %s271_s26, 16  }
  0xb3   : > { %3120 = vsyncadd (%p3519_p0), %s271_s26, 4294967280  ;;  %s1931_s29 = sshll.u32 %s3588_s4, 3  ;;  %p1932_p11 = scmp.ne.s32.totalorder %s3163_s24, 0 }
  0xb4   : > { %s3596_s9 = scalar_lea.vmem [#allocation10], %s1931_s29  ;;  %v3188_v0 = vmov (!%p1932_p11), 0.0  }
  0xb5   : > { %333 = sbr.rel (%p1932_p11) target bundleno = 188 (0xbc), region = 56  ;;  %334 = vst [vmem:[#allocation2] sm:$0xff] (!%p1932_p11), %v3188_v0 }
  0xbc PF: > { %v3599_v1 = vld [vmem:[%s274_s1] sm:$0xff]  ;;  %v3189_v2 = vmov 1   ;;  %v3190_v3 = vmov 2   ;;  %v1933_v4 = vld [vmem:[%s3581_s25 + $0x40] sm:$0xff]  ;;  %v3191_v8 = vmov 0.0|0.0   ;;  %v3192_v12 = vmov 0  }
  0xbd   : > { %2886 = vset.pattern.permute.xlu0 %v3189_v2  ;;  %2888 = vset.pattern.permute.xlu1 %v3190_v3  ;;  %v1934_v5 = vld [vmem:[%s3581_s25 + $0x48] sm:$0xff]  ;;  %v337_v6 = vld [vmem:[%s3581_s25] sm:$0xff]  ;;  %v1935_v11 = vld [vmem:[%s3581_s25 + $0x50] sm:$0xff]  ;;  %v3193_v13 = vmov 3   ;;  %vm3194_vm0 = vmmov 0   ;;  %v3195_v20 = vmov 0.0  }
  0xbe   : > { %361 = vperm.xlu0 %2886, %v3599_v1   ;;  %522 = vperm.xlu1 %2888, %v3599_v1   ;;  %v338_v7 = vld [vmem:[%s3581_s25 + $0x8] sm:$0xff]  ;;  %v2525_v9 = vpack.c.bf16 %v1934_v5, %v1933_v4  ;;  %v1936_v14 = vld [vmem:[%s3581_s25 + $0x58] sm:$0xff]  ;;  %v339_v15 = vld [vmem:[%s3581_s25 + $0x10] sm:$0xff]  ;;  %v3196_v21 = vmov 4   ;;  %v3197_v22 = vmov 5   ;;  %v3198_v29 = vmov 6  }
  0xbf   : > { %2524 = vmatprep.subr.bf16.mxu0 %v3191_v8  ;;  %2536 = vmatprep.subr.bf16.mxu1 %v3191_v8  ;;  %v2537_v10 = vpack.c.bf16 %v338_v7, %v337_v6  ;;  %v340_v16 = vld [vmem:[%s3581_s25 + $0x18] sm:$0xff]  ;;  %v2528_v17 = vpack.c.bf16 %v1936_v14, %v1935_v11  ;;  %v1937_v19 = vld [vmem:[%s3581_s25 + $0x60] sm:$0xff]  ;;  %v1938_v23 = vld [vmem:[%s3581_s25 + $0x68] sm:$0xff]  ;;  %v3199_v30 = vmov 8   ;;  %v3200_v36 = vmov 7   ;;  %p2069_p0 = scmp.ne.s32.totalorder %s3163_s24, 3 }
  0xc0   : > { %2526 = vmatpush3.bf16.msra.mxu0 %v2525_v9  ;;  %v2540_v18 = vpack.c.bf16 %v340_v16, %v339_v15  ;;  %2236 = vmatprep.mubr.msk.f32.mxu0 %vm3194_vm0, %v3195_v20  ;;  %v341_v24 = vld [vmem:[%s3581_s25 + $0x20] sm:$0xff]  ;;  %v342_v25 = vld [vmem:[%s3581_s25 + $0x28] sm:$0xff]  ;;  %v2531_v26 = vpack.c.bf16 %v1938_v23, %v1937_v19  ;;  %v1939_v28 = vld [vmem:[%s3581_s25 + $0x70] sm:$0xff]  ;;  %v3201_v37 = vmov 11   ;;  %v3202_v38 = vmov 9  }
  0xc1   : > { %2538 = vmatpush3.bf16.msra.mxu1 %v2537_v10  ;;  %2527 = vmatprep.subr.bf16.mxu0 %v3191_v8  ;;  %v2543_v27 = vpack.c.bf16 %v342_v25, %v341_v24  ;;  %v1940_v31 = vld [vmem:[%s3581_s25 + $0x78] sm:$0xff]  ;;  %v343_v32 = vld [vmem:[%s3581_s25 + $0x30] sm:$0xff]  ;;  %v3203_v39 = vmov 14   ;;  %v3204_v40 = vmov 10   ;;  %v3205_v41 = vmov 15   ;;  %v1943_v44 = vld [vmem:[%s3581_s25 + $0x80] sm:$0xff] }
  0xc2   : > { %2887 = vset.pattern.permute.xlu0 %v3192_v12  ;;  %2889 = vset.pattern.permute.xlu1 %v3193_v13  ;;  %v344_v33 = vld [vmem:[%s3581_s25 + $0x38] sm:$0xff]  ;;  %v2534_v34 = vpack.c.bf16 %v1940_v31, %v1939_v28  ;;  %v3206_v42 = vmov 12   ;;  %v3207_v43 = vmov 13   ;;  %v1944_v45 = vld [vmem:[%s3581_s25 + $0x88] sm:$0xff]  ;;  %vm365_vm1 = vcmask 523264   ;;  %v1945_v50 = vld [vmem:[%s3581_s25 + $0x90] sm:$0xff] }
  0xc3   : > { %347 = vperm.xlu0 %2887, %v3599_v1   ;;  %610 = vperm.xlu1 %2889, %v3599_v1   ;;  %v2546_v35 = vpack.c.bf16 %v344_v33, %v343_v32  ;;  %v3649_v46 = vld [vmem:[#allocation6] sm:$0xff]  ;;  %v2549_v48 = vpack.c.bf16 %v1944_v45, %v1943_v44  ;;  %v1952_v52 = vld [vmem:[%s3581_s25 + $0xc0] sm:$0xff]  ;;  %v1953_v53 = vld [vmem:[%s3581_s25 + $0xc8] sm:$0xff] }
  0xc4   : > { %2539 = vmatprep.subr.bf16.mxu1 %v3191_v8  ;;  %2255 = vmatprep.mubr.msk.f32.mxu1 %vm3194_vm0, %v3195_v20  ;;  %v1946_v51 = vld [vmem:[%s3581_s25 + $0x98] sm:$0xff]  ;;  %v2561_v56 = vpack.c.bf16 %v1953_v53, %v1952_v52  ;;  %v1947_v57 = vld [vmem:[%s3581_s25 + $0xa0] sm:$0xff]  ;;  %v1948_v58 = vld [vmem:[%s3581_s25 + $0xa8] sm:$0xff] }
  0xc5   : > { %2529 = vmatpush3.bf16.msra.mxu0 %v2528_v17  ;;  %2541 = vmatpush3.bf16.msra.mxu1 %v2540_v18  ;;  %v2552_v54 = vpack.c.bf16 %v1946_v51, %v1945_v50  ;;  %v1954_v60 = vld [vmem:[%s3581_s25 + $0xd0] sm:$0xff]  ;;  %v1955_v61 = vld [vmem:[%s3581_s25 + $0xd8] sm:$0xff]  ;;  %v2555_v62 = vpack.c.bf16 %v1948_v58, %v1947_v57  ;;  %v1956_v2 = vld [vmem:[%s3581_s25 + $0xe0] sm:$0xff] }
  0xc6   : > { %2530 = vmatprep.subr.bf16.mxu0 %v3191_v8  ;;  %2542 = vmatprep.subr.bf16.mxu1 %v3191_v8  ;;  %v2564_v63 = vpack.c.bf16 %v1955_v61, %v1954_v60  ;;  %v1949_v0 = vld [vmem:[%s3581_s25 + $0xb0] sm:$0xff]  ;;  %v1957_v3 = vld [vmem:[%s3581_s25 + $0xe8] sm:$0xff]  ;;  %v1961_v7 = vld [vmem:[%s3581_s25 + $0x100] sm:$0xff] }
  0xc7   : > { %2890 = vset.pattern.permute.xlu1 %v3196_v21  ;;  %2891 = vset.pattern.permute.xlu0 %v3197_v22  ;;  %v2567_v6 = vpack.c.bf16 %v1957_v3, %v1956_v2  ;;  %v1962_v9 = vld [vmem:[%s3581_s25 + $0x108] sm:$0xff]  ;;  %v1958_v10 = vld [vmem:[%s3581_s25 + $0xf0] sm:$0xff]  ;;  %v1959_v11 = vld [vmem:[%s3581_s25 + $0xf8] sm:$0xff] }
  0xc8   : > { %698 = vperm.xlu1 %2890, %v3599_v1   ;;  %786 = vperm.xlu0 %2891, %v3599_v1   ;;  %v2573_v13 = vpack.c.bf16 %v1962_v9, %v1961_v7  ;;  %v2570_v15 = vpack.c.bf16 %v1959_v11, %v1958_v10  ;;  %v1963_v16 = vld [vmem:[%s3581_s25 + $0x110] sm:$0xff]  ;;  %v1964_v17 = vld [vmem:[%s3581_s25 + $0x118] sm:$0xff]  ;;  %v1970_v18 = vld [vmem:[%s3581_s25 + $0x140] sm:$0xff] }
  0xc9   : > { %2532 = vmatpush3.bf16.msra.mxu0 %v2531_v26  ;;  %2544 = vmatpush3.bf16.msra.mxu1 %v2543_v27  ;;  %v1971_v19 = vld [vmem:[%s3581_s25 + $0x148] sm:$0xff]  ;;  %v2576_v22 = vpack.c.bf16 %v1964_v17, %v1963_v16  ;;  %v1965_v24 = vld [vmem:[%s3581_s25 + $0x120] sm:$0xff]  ;;  %v1972_v26 = vld [vmem:[%s3581_s25 + $0x150] sm:$0xff] }
  0xca   : > { %2533 = vmatprep.subr.bf16.mxu0 %v3191_v8  ;;  %2545 = vmatprep.subr.bf16.mxu1 %v3191_v8  ;;  %v2585_v23 = vpack.c.bf16 %v1971_v19, %v1970_v18  ;;  %v1966_v25 = vld [vmem:[%s3581_s25 + $0x128] sm:$0xff]  ;;  %v1973_v27 = vld [vmem:[%s3581_s25 + $0x158] sm:$0xff]  ;;  %v1974_v32 = vld [vmem:[%s3581_s25 + $0x160] sm:$0xff] }
  0xcb   : > { %v2579_v28 = vpack.c.bf16 %v1966_v25, %v1965_v24  ;;  %v1968_v31 = vld [vmem:[%s3581_s25 + $0x138] sm:$0xff]  ;;  %v1975_v33 = vld [vmem:[%s3581_s25 + $0x168] sm:$0xff]  ;;  %v1981_v45 = vld [vmem:[%s3581_s25 + $0x190] sm:$0xff] }
  0xcc   : > { %2892 = vset.pattern.permute.xlu1 %v3198_v29  ;;  %2894 = vset.pattern.permute.xlu0 %v3199_v30  ;;  %v2588_v29 = vpack.c.bf16 %v1973_v27, %v1972_v26  ;;  %v1967_v30 = vld [vmem:[%s3581_s25 + $0x130] sm:$0xff]  ;;  %v1983_v53 = vld [vmem:[%s3581_s25 + $0x1a0] sm:$0xff]  ;;  %v1986_v60 = vld [vmem:[%s3581_s25 + $0x1b8] sm:$0xff] }
  0xcd   : > { %874 = vperm.xlu1 %2892, %v3599_v1   ;;  %1050 = vperm.xlu0 %2894, %v3599_v1   ;;  %v1992_v61 = vld [vmem:[%s3581_s25 + $0x1e0] sm:$0xff]  ;;  %v1998_v3 = vld [vmem:[%s3581_s25 + $0x208] sm:$0xff]  ;;  %v1999_v11 = vld [vmem:[%s3581_s25 + $0x210] sm:$0xff] }
  0xce   : > { %2535 = vmatpush3.bf16.msra.mxu0 %v2534_v34  ;;  %2547 = vmatpush3.bf16.msra.mxu1 %v2546_v35  ;;  %v2582_v35 = vpack.c.bf16 %v1968_v31, %v1967_v30  ;;  %v1997_v2 = vld [vmem:[%s3581_s25 + $0x200] sm:$0xff]  ;;  %v2002_v19 = vld [vmem:[%s3581_s25 + $0x228] sm:$0xff]  ;;  %v2003_v25 = vld [vmem:[%s3581_s25 + $0x230] sm:$0xff] }
  0xcf   : > { %2548 = vmatprep.subr.bf16.mxu0 %v3191_v8  ;;  %2560 = vmatprep.subr.bf16.mxu1 %v3191_v8  ;;  %v2621_v7 = vpack.c.bf16 %v1998_v3, %v1997_v2  ;;  %v2001_v18 = vld [vmem:[%s3581_s25 + $0x220] sm:$0xff]  ;;  %v2004_v26 = vld [vmem:[%s3581_s25 + $0x238] sm:$0xff] }
  0xd0   : > { %v2010_v27 = vld [vmem:[%s3581_s25 + $0x260] sm:$0xff]  ;;  %v2630_v30 = vpack.c.bf16 %v2004_v26, %v2003_v25 }
  0xd1   : > { %2893 = vset.pattern.permute.xlu1 %v3200_v36  ;;  %2897 = vset.pattern.permute.xlu0 %v3201_v37  ;;  %v2591_v36 = vpack.c.bf16 %v1975_v33, %v1974_v32  ;;  %v1979_v37 = vld [vmem:[%s3581_s25 + $0x180] sm:$0xff]  ;;  %v2016_v33 = vld [vmem:[%s3581_s25 + $0x288] sm:$0xff] }
  0xd2   : > { %962 = vperm.xlu1 %2893, %v3599_v1   ;;  %1314 = vperm.xlu0 %2897, %v3599_v1   ;;  %v2015_v32 = vld [vmem:[%s3581_s25 + $0x280] sm:$0xff] }
  0xd6   : > { %2895 = vset.pattern.permute.xlu1 %v3202_v38  ;;  %2900 = vset.pattern.permute.xlu0 %v3203_v39  ;;  %v1980_v38 = vld [vmem:[%s3581_s25 + $0x188] sm:$0xff]  ;;  %v1976_v39 = vld [vmem:[%s3581_s25 + $0x170] sm:$0xff] }
  0xd7   : > { %1138 = vperm.xlu1 %2895, %v3599_v1   ;;  %1578 = vperm.xlu0 %2900, %v3599_v1  }
  0xdb   : > { %2896 = vset.pattern.permute.xlu1 %v3204_v40  ;;  %2902 = vset.pattern.permute.xlu0 %v3205_v41  ;;  %v1977_v40 = vld [vmem:[%s3581_s25 + $0x178] sm:$0xff] }
  0xdc   : > { %1226 = vperm.xlu1 %2896, %v3599_v1   ;;  %v2594_v44 = vpack.c.bf16 %v1977_v40, %v1976_v39  ;;  %v2017_v40 = vld [vmem:[%s3581_s25 + $0x290] sm:$0xff] }
  0xe0   : > { %2898 = vset.pattern.permute.xlu1 %v3206_v42  ;;  %v2597_v42 = vpack.c.bf16 %v1980_v38, %v1979_v37  ;;  %v2645_v37 = vpack.c.bf16 %v2016_v33, %v2015_v32 }
  0xe1   : > { %1402 = vperm.xlu1 %2898, %v3599_v1  }
  0xe5   : > { %2899 = vset.pattern.permute.xlu1 %v3207_v43 }
  0xe6   : > { %1490 = vperm.xlu1 %2899, %v3599_v1  }
  0xea   : > { %2901 = vset.pattern.permute.xlu1 %v3205_v41 }
  0xeb   : > { %1666 = vperm.xlu1 %2901, %v3599_v1   ;;  %v1950_v1 = vld [vmem:[%s3581_s25 + $0xb8] sm:$0xff] }
  0xec   : > { %v2558_v5 = vpack.c.bf16 %v1950_v1, %v1949_v0 }
 0x13d   : > { %v362_v47 = vpop.permute.xlu0 %361  ;;  %v523_v4 = vpop.permute.xlu1 %522 }
 0x13e   : > { %v364_v49 = vmul.f32 %v362_v47, %v3649_v46  ;;  %v525_v12 = vmul.f32 %v523_v4, %v3649_v46  ;;  %v1982_v47 = vld [vmem:[%s3581_s25 + $0x198] sm:$0xff]  ;;  %v1994_v4 = vld [vmem:[%s3581_s25 + $0x1f0] sm:$0xff] }
 0x13f   : > { %v2600_v51 = vpack.c.bf16 %v1982_v47, %v1981_v45 }
 0x140   : > { %2237 = vmatmul.mubr.msk.f32.vlgmr.msra.gmra.mrb[0].mxu0 %vm365_vm1, %v364_v49  ;;  %v1989_v49 = vld [vmem:[%s3581_s25 + $0x1c8] sm:$0xff] }
 0x141   : > { %2550 = vmatpush3.bf16.msra.mxu0 %v2549_v48  ;;  %2274 = vmatprep.mubr.msk.f32.mxu0 %vm3194_vm0, %v3195_v20  ;;  %v1988_v48 = vld [vmem:[%s3581_s25 + $0x1c0] sm:$0xff] }
 0x142   : > { %v348_v55 = vpop.permute.xlu0 %347  ;;  %2551 = vmatprep.subr.bf16.mxu0 %v3191_v8  ;;  %v611_v14 = vpop.permute.xlu1 %610  ;;  %v2609_v52 = vpack.c.bf16 %v1989_v49, %v1988_v48  ;;  %v2019_v48 = vld [vmem:[%s3581_s25 + $0x2a0] sm:$0xff]  ;;  %v2020_v49 = vld [vmem:[%s3581_s25 + $0x2a8] sm:$0xff] }
 0x143   : > { %v350_v59 = vmul.f32 %v348_v55, %v3649_v46  ;;  %v613_v21 = vmul.f32 %v611_v14, %v3649_v46  ;;  %v1990_v55 = vld [vmem:[%s3581_s25 + $0x1d0] sm:$0xff]  ;;  %v2007_v14 = vld [vmem:[%s3581_s25 + $0x248] sm:$0xff] }
 0x145   : > { %2553 = vmatpush3.bf16.msra.mxu0 %v2552_v54  ;;  %2256 = vmatmul.mubr.msk.f32.vlgmr.msra.gmra.mrb[0].mxu1 %vm365_vm1, %v350_v59  ;;  %v1984_v54 = vld [vmem:[%s3581_s25 + $0x1a8] sm:$0xff]  ;;  %v1985_v59 = vld [vmem:[%s3581_s25 + $0x1b0] sm:$0xff] }
 0x146   : > { %2562 = vmatpush3.bf16.msra.mxu1 %v2561_v56  ;;  %2554 = vmatprep.subr.bf16.mxu0 %v3191_v8  ;;  %v1991_v56 = vld [vmem:[%s3581_s25 + $0x1d8] sm:$0xff]  ;;  %v2603_v57 = vpack.c.bf16 %v1984_v54, %v1983_v53  ;;  %v2606_v0 = vpack.c.bf16 %v1986_v60, %v1985_v59  ;;  %v2021_v54 = vld [vmem:[%s3581_s25 + $0x2b0] sm:$0xff] }
 0x147   : > { %2563 = vmatprep.subr.bf16.mxu1 %v3191_v8  ;;  %2293 = vmatprep.mubr.msk.f32.mxu1 %vm3194_vm0, %v3195_v20  ;;  %v699_v34 = vpop.permute.xlu1 %698  ;;  %v787_v43 = vpop.permute.xlu0 %786  ;;  %v2612_v58 = vpack.c.bf16 %v1991_v56, %v1990_v55  ;;  %v2022_v55 = vld [vmem:[%s3581_s25 + $0x2b8] sm:$0xff]  ;;  %v2028_v56 = vld [vmem:[%s3581_s25 + $0x2e0] sm:$0xff] }
 0x148   : > { %v701_v41 = vmul.f32 %v699_v34, %v3649_v46  ;;  %v789_v50 = vmul.f32 %v787_v43, %v3649_v46  ;;  %v2012_v34 = vld [vmem:[%s3581_s25 + $0x270] sm:$0xff]  ;;  %v2025_v43 = vld [vmem:[%s3581_s25 + $0x2c8] sm:$0xff]  ;;  %v2654_v59 = vpack.c.bf16 %v2022_v55, %v2021_v54 }
 0x149   : > { %2556 = vmatpush3.bf16.msra.mxu0 %v2555_v62  ;;  %v1993_v62 = vld [vmem:[%s3581_s25 + $0x1e8] sm:$0xff] }
 0x14a   : > { %2565 = vmatpush3.bf16.msra.mxu1 %v2564_v63  ;;  %2557 = vmatprep.subr.bf16.mxu0 %v3191_v8  ;;  %v2615_v1 = vpack.c.bf16 %v1993_v62, %v1992_v61  ;;  %v2033_v61 = vld [vmem:[%s3581_s25 + $0x300] sm:$0xff]  ;;  %v2034_v62 = vld [vmem:[%s3581_s25 + $0x308] sm:$0xff] }
 0x14b   : > { %2566 = vmatprep.subr.bf16.mxu1 %v3191_v8  ;;  %v2669_v2 = vpack.c.bf16 %v2034_v62, %v2033_v61 }
 0x14c   : > { %v875_v63 = vpop.permute.xlu1 %874 }
 0x14d   : > { %2559 = vmatpush3.bf16.msra.mxu0 %v2558_v5  ;;  %v1995_v5 = vld [vmem:[%s3581_s25 + $0x1f8] sm:$0xff] }
 0x14e   : > { %2568 = vmatpush3.bf16.msra.mxu1 %v2567_v6  ;;  %2572 = vmatprep.subr.bf16.mxu0 %v3191_v8  ;;  %v877_v6 = vmul.f32 %v875_v63, %v3649_v46  ;;  %v2618_v10 = vpack.c.bf16 %v1995_v5, %v1994_v4  ;;  %v2030_v63 = vld [vmem:[%s3581_s25 + $0x2f0] sm:$0xff] }
 0x14f   : > { %2569 = vmatprep.subr.bf16.mxu1 %v3191_v8  ;;  %v2035_v5 = vld [vmem:[%s3581_s25 + $0x310] sm:$0xff] }
 0x150   : > { %2275 = vmatmul.mubr.msk.f32.vlgmr.msra.gmra.mrb[2].mxu0 %vm365_vm1, %v525_v12  ;;  %v2000_v12 = vld [vmem:[%s3581_s25 + $0x218] sm:$0xff] }
 0x151   : > { %2574 = vmatpush3.bf16.msra.mxu0 %v2573_v13  ;;  %2312 = vmatprep.mubr.msk.f32.mxu0 %vm3194_vm0, %v3195_v20  ;;  %v963_v9 = vpop.permute.xlu1 %962  ;;  %v2006_v13 = vld [vmem:[%s3581_s25 + $0x240] sm:$0xff]  ;;  %v2624_v16 = vpack.c.bf16 %v2000_v12, %v1999_v11 }
 0x152   : > { %2571 = vmatpush3.bf16.msra.mxu1 %v2570_v15  ;;  %2575 = vmatprep.subr.bf16.mxu0 %v3191_v8  ;;  %v965_v15 = vmul.f32 %v963_v9, %v3649_v46  ;;  %v2633_v17 = vpack.c.bf16 %v2007_v14, %v2006_v13  ;;  %v2043_v9 = vld [vmem:[%s3581_s25 + $0x348] sm:$0xff]  ;;  %v2037_v13 = vld [vmem:[%s3581_s25 + $0x320] sm:$0xff] }
 0x153   : > { %2584 = vmatprep.subr.bf16.mxu1 %v3191_v8  ;;  %v2038_v14 = vld [vmem:[%s3581_s25 + $0x328] sm:$0xff] }
 0x155   : > { %2294 = vmatmul.mubr.msk.f32.vlgmr.msra.gmra.mrb[2].mxu1 %vm365_vm1, %v613_v21  ;;  %2577 = vmatpush3.bf16.msra.mxu0 %v2576_v22  ;;  %v2008_v21 = vld [vmem:[%s3581_s25 + $0x250] sm:$0xff]  ;;  %v2009_v22 = vld [vmem:[%s3581_s25 + $0x258] sm:$0xff] }
 0x156   : > { %2586 = vmatpush3.bf16.msra.mxu1 %v2585_v23  ;;  %2578 = vmatprep.subr.bf16.mxu0 %v3191_v8  ;;  %v2627_v23 = vpack.c.bf16 %v2002_v19, %v2001_v18  ;;  %v2636_v24 = vpack.c.bf16 %v2009_v22, %v2008_v21  ;;  %v1139_v38 = vpop.permute.xlu1 %1138  ;;  %v2039_v19 = vld [vmem:[%s3581_s25 + $0x330] sm:$0xff]  ;;  %v2040_v21 = vld [vmem:[%s3581_s25 + $0x338] sm:$0xff]  ;;  %v2046_v22 = vld [vmem:[%s3581_s25 + $0x360] sm:$0xff] }
 0x157   : > { %2587 = vmatprep.subr.bf16.mxu1 %v3191_v8  ;;  %2331 = vmatprep.mubr.msk.f32.mxu1 %vm3194_vm0, %v3195_v20  ;;  %v2678_v25 = vpack.c.bf16 %v2040_v21, %v2039_v19 }
 0x159   : > { %2580 = vmatpush3.bf16.msra.mxu0 %v2579_v28  ;;  %v2011_v28 = vld [vmem:[%s3581_s25 + $0x268] sm:$0xff] }
 0x15a   : > { %2589 = vmatpush3.bf16.msra.mxu1 %v2588_v29  ;;  %2581 = vmatprep.subr.bf16.mxu0 %v3191_v8  ;;  %v1051_v29 = vpop.permute.xlu0 %1050  ;;  %v2639_v31 = vpack.c.bf16 %v2011_v28, %v2010_v27  ;;  %v2051_v27 = vld [vmem:[%s3581_s25 + $0x380] sm:$0xff]  ;;  %v2052_v28 = vld [vmem:[%s3581_s25 + $0x388] sm:$0xff] }
 0x15b   : > { %2590 = vmatprep.subr.bf16.mxu1 %v3191_v8  ;;  %v2693_v32 = vpack.c.bf16 %v2052_v28, %v2051_v27 }
 0x15d   : > { %2583 = vmatpush3.bf16.msra.mxu0 %v2582_v35  ;;  %v2013_v35 = vld [vmem:[%s3581_s25 + $0x278] sm:$0xff] }
 0x15e   : > { %2592 = vmatpush3.bf16.msra.mxu1 %v2591_v36  ;;  %2596 = vmatprep.subr.bf16.mxu0 %v3191_v8  ;;  %v1053_v36 = vmul.f32 %v1051_v29, %v3649_v46  ;;  %v2642_v39 = vpack.c.bf16 %v2013_v35, %v2012_v34  ;;  %v1315_v3 = vpop.permute.xlu0 %1314  ;;  %v2048_v29 = vld [vmem:[%s3581_s25 + $0x370] sm:$0xff] }
 0x15f   : > { %2593 = vmatprep.subr.bf16.mxu1 %v3191_v8  ;;  %v2053_v35 = vld [vmem:[%s3581_s25 + $0x390] sm:$0xff] }
 0x160   : > { %2313 = vmatmul.mubr.msk.f32.vlgmr.msra.gmra.mrb[4].mxu0 %vm365_vm1, %v701_v41  ;;  %v2018_v41 = vld [vmem:[%s3581_s25 + $0x298] sm:$0xff] }
 0x161   : > { %2598 = vmatpush3.bf16.msra.mxu0 %v2597_v42  ;;  %2350 = vmatprep.mubr.msk.f32.mxu0 %vm3194_vm0, %v3195_v20  ;;  %v2024_v42 = vld [vmem:[%s3581_s25 + $0x2c0] sm:$0xff]  ;;  %v2648_v45 = vpack.c.bf16 %v2018_v41, %v2017_v40 }
 0x162   : > { %2595 = vmatpush3.bf16.msra.mxu1 %v2594_v44  ;;  %2599 = vmatprep.subr.bf16.mxu0 %v3191_v8  ;;  %v1141_v44 = vmul.f32 %v1139_v38, %v3649_v46  ;;  %v2657_v47 = vpack.c.bf16 %v2025_v43, %v2024_v42  ;;  %v2061_v38 = vld [vmem:[%s3581_s25 + $0x3c8] sm:$0xff]  ;;  %v2055_v42 = vld [vmem:[%s3581_s25 + $0x3a0] sm:$0xff] }
 0x163   : > { %2608 = vmatprep.subr.bf16.mxu1 %v3191_v8  ;;  %v2056_v43 = vld [vmem:[%s3581_s25 + $0x3a8] sm:$0xff] }
 0x165   : > { %2332 = vmatmul.mubr.msk.f32.vlgmr.msra.gmra.mrb[4].mxu1 %vm365_vm1, %v789_v50  ;;  %2601 = vmatpush3.bf16.msra.mxu0 %v2600_v51  ;;  %v2026_v50 = vld [vmem:[%s3581_s25 + $0x2d0] sm:$0xff]  ;;  %v2027_v51 = vld [vmem:[%s3581_s25 + $0x2d8] sm:$0xff] }
 0x166   : > { %2610 = vmatpush3.bf16.msra.mxu1 %v2609_v52  ;;  %2602 = vmatprep.subr.bf16.mxu0 %v3191_v8  ;;  %v2651_v52 = vpack.c.bf16 %v2020_v49, %v2019_v48  ;;  %v2660_v53 = vpack.c.bf16 %v2027_v51, %v2026_v50  ;;  %v2057_v49 = vld [vmem:[%s3581_s25 + $0x3b0] sm:$0xff]  ;;  %v2058_v50 = vld [vmem:[%s3581_s25 + $0x3b8] sm:$0xff]  ;;  %v2064_v51 = vld [vmem:[%s3581_s25 + $0x3e0] sm:$0xff] }
 0x167   : > { %2611 = vmatprep.subr.bf16.mxu1 %v3191_v8  ;;  %2369 = vmatprep.mubr.msk.f32.mxu1 %vm3194_vm0, %v3195_v20  ;;  %v2702_v54 = vpack.c.bf16 %v2058_v50, %v2057_v49 }
 0x169   : > { %2604 = vmatpush3.bf16.msra.mxu0 %v2603_v57  ;;  %v2029_v57 = vld [vmem:[%s3581_s25 + $0x2e8] sm:$0xff] }
 0x16a   : > { %2613 = vmatpush3.bf16.msra.mxu1 %v2612_v58  ;;  %2605 = vmatprep.subr.bf16.mxu0 %v3191_v8  ;;  %v1227_v58 = vpop.permute.xlu1 %1226  ;;  %v2663_v60 = vpack.c.bf16 %v2029_v57, %v2028_v56  ;;  %v2066_v56 = vld [vmem:[%s3581_s25 + $0x3f0] sm:$0xff]  ;;  %v2067_v57 = vld [vmem:[%s3581_s25 + $0x3f8] sm:$0xff] }
 0x16b   : > { %2614 = vmatprep.subr.bf16.mxu1 %v3191_v8 }
 0x16d   : > { %2607 = vmatpush3.bf16.msra.mxu0 %v2606_v0  ;;  %v2031_v0 = vld [vmem:[%s3581_s25 + $0x2f8] sm:$0xff] }
 0x16e   : > { %2616 = vmatpush3.bf16.msra.mxu1 %v2615_v1  ;;  %2620 = vmatprep.subr.bf16.mxu0 %v3191_v8  ;;  %v1229_v1 = vmul.f32 %v1227_v58, %v3649_v46  ;;  %v2666_v4 = vpack.c.bf16 %v2031_v0, %v2030_v63 }
 0x16f   : > { %2617 = vmatprep.subr.bf16.mxu1 %v3191_v8 }
 0x170   : > { %2351 = vmatmul.mubr.msk.f32.vlgmr.msra.gmra.mrb[6].mxu0 %vm365_vm1, %v877_v6  ;;  %v2036_v6 = vld [vmem:[%s3581_s25 + $0x318] sm:$0xff] }
 0x171   : > { %2622 = vmatpush3.bf16.msra.mxu0 %v2621_v7  ;;  %2388 = vmatprep.mubr.msk.f32.mxu0 %vm3194_vm0, %v3195_v20  ;;  %v2042_v7 = vld [vmem:[%s3581_s25 + $0x340] sm:$0xff]  ;;  %v2672_v11 = vpack.c.bf16 %v2036_v6, %v2035_v5 }
 0x172   : > { %2619 = vmatpush3.bf16.msra.mxu1 %v2618_v10  ;;  %2623 = vmatprep.subr.bf16.mxu0 %v3191_v8  ;;  %v1317_v10 = vmul.f32 %v1315_v3, %v3649_v46  ;;  %v2681_v12 = vpack.c.bf16 %v2043_v9, %v2042_v7 }
 0x173   : > { %2632 = vmatprep.subr.bf16.mxu1 %v3191_v8 }
 0x175   : > { %2370 = vmatmul.mubr.msk.f32.vlgmr.msra.gmra.mrb[6].mxu1 %vm365_vm1, %v965_v15  ;;  %2625 = vmatpush3.bf16.msra.mxu0 %v2624_v16  ;;  %v2044_v15 = vld [vmem:[%s3581_s25 + $0x350] sm:$0xff]  ;;  %v2045_v16 = vld [vmem:[%s3581_s25 + $0x358] sm:$0xff] }
 0x176   : > { %2634 = vmatpush3.bf16.msra.mxu1 %v2633_v17  ;;  %2626 = vmatprep.subr.bf16.mxu0 %v3191_v8  ;;  %v2675_v17 = vpack.c.bf16 %v2038_v14, %v2037_v13  ;;  %v2684_v18 = vpack.c.bf16 %v2045_v16, %v2044_v15 }
 0x177   : > { %2635 = vmatprep.subr.bf16.mxu1 %v3191_v8  ;;  %2407 = vmatprep.mubr.msk.f32.mxu1 %vm3194_vm0, %v3195_v20 }
 0x179   : > { %2628 = vmatpush3.bf16.msra.mxu0 %v2627_v23  ;;  %v2047_v23 = vld [vmem:[%s3581_s25 + $0x368] sm:$0xff] }
 0x17a   : > { %2637 = vmatpush3.bf16.msra.mxu1 %v2636_v24  ;;  %2629 = vmatprep.subr.bf16.mxu0 %v3191_v8  ;;  %v1403_v24 = vpop.permute.xlu1 %1402  ;;  %v2687_v26 = vpack.c.bf16 %v2047_v23, %v2046_v22 }
 0x17b   : > { %2638 = vmatprep.subr.bf16.mxu1 %v3191_v8 }
 0x17d   : > { %2631 = vmatpush3.bf16.msra.mxu0 %v2630_v30  ;;  %v2049_v30 = vld [vmem:[%s3581_s25 + $0x378] sm:$0xff] }
 0x17e   : > { %2640 = vmatpush3.bf16.msra.mxu1 %v2639_v31  ;;  %2644 = vmatprep.subr.bf16.mxu0 %v3191_v8  ;;  %v1405_v31 = vmul.f32 %v1403_v24, %v3649_v46  ;;  %v1491_v33 = vpop.permute.xlu1 %1490  ;;  %v2690_v34 = vpack.c.bf16 %v2049_v30, %v2048_v29 }
 0x17f   : > { %2641 = vmatprep.subr.bf16.mxu1 %v3191_v8 }
 0x180   : > { %2389 = vmatmul.mubr.msk.f32.vlgmr.msra.gmra.mrb[8].mxu0 %vm365_vm1, %v1053_v36  ;;  %v2054_v36 = vld [vmem:[%s3581_s25 + $0x398] sm:$0xff] }
 0x181   : > { %2646 = vmatpush3.bf16.msra.mxu0 %v2645_v37  ;;  %2426 = vmatprep.mubr.msk.f32.mxu0 %vm3194_vm0, %v3195_v20  ;;  %v2060_v37 = vld [vmem:[%s3581_s25 + $0x3c0] sm:$0xff]  ;;  %v2696_v40 = vpack.c.bf16 %v2054_v36, %v2053_v35 }
 0x182   : > { %2643 = vmatpush3.bf16.msra.mxu1 %v2642_v39  ;;  %2647 = vmatprep.subr.bf16.mxu0 %v3191_v8  ;;  %v1493_v39 = vmul.f32 %v1491_v33, %v3649_v46  ;;  %v2705_v41 = vpack.c.bf16 %v2061_v38, %v2060_v37 }
 0x183   : > { %2656 = vmatprep.subr.bf16.mxu1 %v3191_v8 }
 0x185   : > { %2408 = vmatmul.mubr.msk.f32.vlgmr.msra.gmra.mrb[8].mxu1 %vm365_vm1, %v1141_v44  ;;  %2649 = vmatpush3.bf16.msra.mxu0 %v2648_v45  ;;  %v2062_v44 = vld [vmem:[%s3581_s25 + $0x3d0] sm:$0xff]  ;;  %v2063_v45 = vld [vmem:[%s3581_s25 + $0x3d8] sm:$0xff] }
 0x186   : > { %2658 = vmatpush3.bf16.msra.mxu1 %v2657_v47  ;;  %2650 = vmatprep.subr.bf16.mxu0 %v3191_v8  ;;  %v2699_v47 = vpack.c.bf16 %v2056_v43, %v2055_v42  ;;  %v2708_v48 = vpack.c.bf16 %v2063_v45, %v2062_v44  ;;  %v1744_v42 = vld [vmem:[#allocation2] sm:$0xff] }
 0x187   : > { %2659 = vmatprep.subr.bf16.mxu1 %v3191_v8  ;;  %2445 = vmatprep.mubr.msk.f32.mxu1 %vm3194_vm0, %v3195_v20 }
 0x189   : > { %2652 = vmatpush3.bf16.msra.mxu0 %v2651_v52  ;;  %v2065_v52 = vld [vmem:[%s3581_s25 + $0x3e8] sm:$0xff] }
 0x18a   : > { %2661 = vmatpush3.bf16.msra.mxu1 %v2660_v53  ;;  %2653 = vmatprep.subr.bf16.mxu0 %v3191_v8  ;;  %v1579_v53 = vpop.permute.xlu0 %1578  ;;  %v2711_v55 = vpack.c.bf16 %v2065_v52, %v2064_v51 }
 0x18b   : > { %2662 = vmatprep.subr.bf16.mxu1 %v3191_v8  ;;  %v1581_v58 = vmul.f32 %v1579_v53, %v3649_v46 }
 0x18d   : > { %2655 = vmatpush3.bf16.msra.mxu0 %v2654_v59  ;;  %v1667_v59 = vpop.permute.xlu1 %1666 }
 0x18e   : > { %2664 = vmatpush3.bf16.msra.mxu1 %v2663_v60  ;;  %2668 = vmatprep.subr.bf16.mxu0 %v3191_v8  ;;  %v2714_v60 = vpack.c.bf16 %v2067_v57, %v2066_v56 }
 0x18f   : > { %2665 = vmatprep.subr.bf16.mxu1 %v3191_v8 }
 0x190   : > { %2427 = vmatmul.mubr.msk.f32.vlgmr.msra.gmra.mrb[10].mxu0 %vm365_vm1, %v1229_v1 }
 0x191   : > { %2670 = vmatpush3.bf16.msra.mxu0 %v2669_v2  ;;  %2464 = vmatprep.mubr.msk.f32.mxu0 %vm3194_vm0, %v3195_v20 }
 0x192   : > { %2667 = vmatpush3.bf16.msra.mxu1 %v2666_v4  ;;  %2671 = vmatprep.subr.bf16.mxu0 %v3191_v8 }
 0x193   : > { %2680 = vmatprep.subr.bf16.mxu1 %v3191_v8 }
 0x195   : > { %2446 = vmatmul.mubr.msk.f32.vlgmr.msra.gmra.mrb[10].mxu1 %vm365_vm1, %v1317_v10  ;;  %2673 = vmatpush3.bf16.msra.mxu0 %v2672_v11 }
 0x196   : > { %2682 = vmatpush3.bf16.msra.mxu1 %v2681_v12  ;;  %2674 = vmatprep.subr.bf16.mxu0 %v3191_v8 }
 0x197   : > { %2683 = vmatprep.subr.bf16.mxu1 %v3191_v8  ;;  %2483 = vmatprep.mubr.msk.f32.mxu1 %vm3194_vm0, %v3195_v20 }
 0x199   : > { %2676 = vmatpush3.bf16.msra.mxu0 %v2675_v17 }
 0x19a   : > { %2685 = vmatpush3.bf16.msra.mxu1 %v2684_v18  ;;  %2677 = vmatprep.subr.bf16.mxu0 %v3191_v8 }
 0x19b   : > { %2686 = vmatprep.subr.bf16.mxu1 %v3191_v8 }
 0x19d   : > { %2679 = vmatpush3.bf16.msra.mxu0 %v2678_v25 }
 0x19e   : > { %2688 = vmatpush3.bf16.msra.mxu1 %v2687_v26  ;;  %2692 = vmatprep.subr.bf16.mxu0 %v3191_v8 }
 0x19f   : > { %2689 = vmatprep.subr.bf16.mxu1 %v3191_v8 }
 0x1a0   : > { %2465 = vmatmul.mubr.msk.f32.vlgmr.msra.gmra.mrb[12].mxu0 %vm365_vm1, %v1405_v31 }
 0x1a1   : > { %2694 = vmatpush3.bf16.msra.mxu0 %v2693_v32  ;;  %2502 = vmatprep.mubr.msk.f32.mxu0 %vm3194_vm0, %v3195_v20 }
 0x1a2   : > { %2691 = vmatpush3.bf16.msra.mxu1 %v2690_v34  ;;  %2695 = vmatprep.subr.bf16.mxu0 %v3191_v8 }
 0x1a3   : > { %2704 = vmatprep.subr.bf16.mxu1 %v3191_v8 }
 0x1a5   : > { %2484 = vmatmul.mubr.msk.f32.vlgmr.msra.gmra.mrb[12].mxu1 %vm365_vm1, %v1493_v39  ;;  %2697 = vmatpush3.bf16.msra.mxu0 %v2696_v40 }
 0x1a6   : > { %2706 = vmatpush3.bf16.msra.mxu1 %v2705_v41  ;;  %2698 = vmatprep.subr.bf16.mxu0 %v3191_v8 }
 0x1a7   : > { %2707 = vmatprep.subr.bf16.mxu1 %v3191_v8  ;;  %2521 = vmatprep.mubr.msk.f32.mxu1 %vm3194_vm0, %v3195_v20  ;;  %v1669_v20 = vmul.f32 %v1667_v59, %v3649_v46 }
 0x1a9   : > { %2700 = vmatpush3.bf16.msra.mxu0 %v2699_v47 }
 0x1aa   : > { %2709 = vmatpush3.bf16.msra.mxu1 %v2708_v48  ;;  %2701 = vmatprep.subr.bf16.mxu0 %v3191_v8  ;;  %v2070_v48 = vld [vmem:[%s295_s14] ss:$0 sm:$0xff] (!%p2069_p0) }
 0x1ab   : > { %2710 = vmatprep.subr.bf16.mxu1 %v3191_v8 }
 0x1ad   : > { %2703 = vmatpush3.bf16.msra.mxu0 %v2702_v54 }
 0x1ae   : > { %2712 = vmatpush3.bf16.msra.mxu1 %v2711_v55 }
 0x1af   : > { %2713 = vmatprep.subr.bf16.mxu1 %v3191_v8 }
 0x1b0   : > { %2503 = vmatmul.mubr.msk.f32.vlgmr.msra.gmra.mrb[14].mxu0 %vm365_vm1, %v1581_v58 }
 0x1b2   : > { %2715 = vmatpush3.bf16.msra.mxu1 %v2714_v60 }
 0x1b5   : > { %2522 = vmatmul.mubr.msk.f32.vlgmr.msra.gmra.mrb[14].mxu1 %vm365_vm1, %v1669_v20 }
 0x213   : > { %v435_v61 = vpop.f32.mrb[0].mxu0 }
 0x214   : > { %v2238_v62 = vpop.f32.mrb[1].mxu0 }
 0x218   : > { %v508_v63 = vpop.f32.mrb[0].mxu1 }
 0x219   : > { %v509_v0 = vadd.f32 %v508_v63, %v435_v61  ;;  %v2257_v1 = vpop.f32.mrb[1].mxu1 }
 0x223   : > { %v595_v2 = vpop.f32.mrb[2].mxu0 }
 0x224   : > { %v599_v3 = vadd.f32 %v595_v2, %v509_v0  ;;  %v2276_v4 = vpop.f32.mrb[3].mxu0 }
 0x228   : > { %v683_v5 = vpop.f32.mrb[2].mxu1 }
 0x229   : > { %v687_v6 = vadd.f32 %v683_v5, %v599_v3  ;;  %v2295_v7 = vpop.f32.mrb[3].mxu1 }
 0x233   : > { %v771_v9 = vpop.f32.mrb[4].mxu0 }
 0x234   : > { %v775_v8 = vadd.f32 %v771_v9, %v687_v6  ;;  %v2314_v10 = vpop.f32.mrb[5].mxu0 }
 0x238   : > { %v859_v11 = vpop.f32.mrb[4].mxu1 }
 0x239   : > { %v863_v12 = vadd.f32 %v859_v11, %v775_v8  ;;  %v2333_v46 = vpop.f32.mrb[5].mxu1 }
 0x243   : > { %v947_v13 = vpop.f32.mrb[6].mxu0 }
 0x244   : > { %v951_v14 = vadd.f32 %v947_v13, %v863_v12  ;;  %v2352_v15 = vpop.f32.mrb[7].mxu0 }
 0x248   : > { %v1035_v16 = vpop.f32.mrb[6].mxu1 }
 0x249   : > { %v1039_v17 = vadd.f32 %v1035_v16, %v951_v14  ;;  %v2371_v18 = vpop.f32.mrb[7].mxu1 }
 0x253   : > { %v1123_v19 = vpop.f32.mrb[8].mxu0 }
 0x254   : > { %v1127_v21 = vadd.f32 %v1123_v19, %v1039_v17  ;;  %v2390_v22 = vpop.f32.mrb[9].mxu0 }
 0x258   : > { %v1211_v23 = vpop.f32.mrb[8].mxu1 }
 0x259   : > { %v1215_v24 = vadd.f32 %v1211_v23, %v1127_v21  ;;  %v2409_v25 = vpop.f32.mrb[9].mxu1 }
 0x263   : > { %v1299_v26 = vpop.f32.mrb[10].mxu0 }
 0x264   : > { %v1303_v27 = vadd.f32 %v1299_v26, %v1215_v24  ;;  %v2428_v28 = vpop.f32.mrb[11].mxu0 }
 0x268   : > { %v1387_v29 = vpop.f32.mrb[10].mxu1 }
 0x269   : > { %v1391_v30 = vadd.f32 %v1387_v29, %v1303_v27  ;;  %v2447_v31 = vpop.f32.mrb[11].mxu1 }
 0x273   : > { %v1475_v32 = vpop.f32.mrb[12].mxu0 }
 0x274   : > { %v1479_v33 = vadd.f32 %v1475_v32, %v1391_v30  ;;  %v2466_v34 = vpop.f32.mrb[13].mxu0 }
 0x278   : > { %v1563_v35 = vpop.f32.mrb[12].mxu1 }
 0x279   : > { %v1567_v36 = vadd.f32 %v1563_v35, %v1479_v33  ;;  %v2485_v37 = vpop.f32.mrb[13].mxu1 }
 0x283   : > { %v1651_v38 = vpop.f32.mrb[14].mxu0 }
 0x284   : > { %v1655_v39 = vadd.f32 %v1651_v38, %v1567_v36  ;;  %v2504_v40 = vpop.f32.mrb[15].mxu0 }
 0x287   : > { %1750 = sbr.rel (%p2069_p0) target bundleno = 664 (0x298), region = 60 }
 0x288   : > { %v1739_v41 = vpop.f32.mrb[14].mxu1 }
 0x289   : > { %v1743_v43 = vadd.f32 %v1739_v41, %v1655_v39  ;;  %v2523_v44 = vpop.f32.mrb[15].mxu1 }
 0x28b   : > { %v1745_v45 = vadd.f32 %v1744_v42, %v1743_v43 }
 0x28d   : > { %1746 = vst [vmem:[#allocation2] sm:$0xff] %v1745_v45 }
 0x294   : > { %v1751_v47 = vld [vmem:[#allocation2] sm:$0xff] }
 0x295   : > { %v1759_v49 = vadd.f32 %v2070_v48, %v1751_v47 }
 0x297   : > { %1760 = vst [vmem:[%s3596_s9] sm:$0xff] %v1759_v49 }
 0x298 PF: > { %s4009_s12 = sld [smem:[#allocation17_spill]]  ;;  %s4010_s8 = sld [smem:[#allocation24_spill]] }
 0x299   : > { %s1777_s24 = sshll.u32 %s3596_s9, 4  ;;  %s1762_s18 = scalar_lea.sflag [#allocation5], %s3588_s4  ;;  %s1778_s24 = int_to_ptr.vmem [resolvable:$true] %s1777_s24 }
 0x29a   : > { %s3021_s26 = scalar_lea.vmem %s1778_s24, 128  ;;  %p4011_p5 = scmp.ne.s32.totalorder %s3998_s21, 0 }
 0x29b   : > { %p3022_p10 = scmp.ne.s32.totalorder %s1778_s24, %s3021_s26  ;;  %s3208_s1 = smov [#allocation10]  }
 0x29c   : > { %s3025_s30 = sshll.u32 %s3208_s1, 4  ;;  %s3026_s30 = int_to_ptr.vmem [resolvable:$false] %s3025_s30 }
 0x29d   : > { %p3023_p6 = pnand %p3022_p10, %p4011_p5  ;;  %s3027_s7 = scalar_lea.vmem %s3026_s30, 256 }
 0x29e   : > { %s2072_s5 = sshll.u32 %s4009_s12, 7  ;;  %p3028_p13 = scmp.lt.s32.totalorder %s1778_s24, %s3026_s30 }
 0x29f   : > { %s3883_s23 = scalar_lea.hbm %s4010_s8, %s2072_s5  ;;  %p3024_p3 = pneg %p3023_p6 }
 0x2a0   : > { %p3029_p8 = scmp.lt.s32.totalorder %s3027_s7, %s3021_s26 }
 0x2a2   : > { %p3030_p12 = por %p3029_p8, %p3028_p13 }
 0x2a4   : > { %p3031_p7 = pnand %p3030_p12, %p3024_p3 }
 0x2a6   : > { %3034 = shalt.err (!%p3031_p7)
}
 0x2a7   : > { %s3035_s25 = scalar_lea.hbm %s3883_s23, 128  ;;  %s3039_s29 = scalar_lea.hbm %s4010_s8, 256 }
 0x2a8   : > { %p3036_p1 = scmp.ne.s32.totalorder %s3883_s23, %s3035_s25  ;;  %p3040_p4 = scmp.lt.u32.totalorder %s3883_s23, %s4010_s8 }
 0x2a9   : > { %p3041_p11 = scmp.lt.u32.totalorder %s3039_s29, %s3035_s25  ;;  %p3043_p10 = scmp.lt.u32.totalorder %s3035_s25, %s3883_s23 }
 0x2aa   : > { %p3037_p2 = pnand %p3036_p1, %p4011_p5 }
 0x2ab   : > { %p3042_p0 = por %p3041_p11, %p3040_p4 }
 0x2ac   : > { %p3038_p9 = pneg %p3037_p2 }
 0x2ad   : > { %p3044_p6 = por %p3043_p10, %p3042_p0 }
 0x2af   : > { %p3045_p3 = pnand %p3044_p6, %p3038_p9 }
 0x2b1   : > { %3048 = shalt.err (!%p3045_p3)
}
 0x2b2   : > { %2726 = dma.vmem_to_hbm [thread:$0]  (%p4011_p5), %s1778_s24, 128, %s3883_s23, %s1762_s18  }
 0x2b3 PF: > { %p2749_p13 = scmp.ge.s32.totalorder %s3179_s28, 2  ;;  %s1789_s5 = sand.u32 1, %s3127_s15  }
 0x2b4   : > { %p4012_p8 = scmp.ne.s32.totalorder %s4001_s10, 0  ;;  %s1790_s11 = scalar_lea.sflag [#allocation5], %s1789_s5 }
 0x2b6   : > { %p2743_p12 = pnand %p2749_p13, %p4012_p8 }
 0x2b8   : > { %3122 = dma.done.wait (!%p2743_p12), %s1790_s11, 128  }
 0x2b9   : > { %3124 = vsyncadd (!%p2743_p12), %s1790_s11, 4294967168  ;;  %s21_s28 = sadd.s32 1, %s3179_s28   ;;  %s4014_s23 = sld [smem:[#allocation16_spill]] }
 0x2ba   : > { %p3909_p7 = scmp.ge.s32.totalorder %s21_s28, 10   ;;  %s4015_s24 = sld [smem:[#allocation21_spill]] }
 0x2bb   : > { %s4016_s10 = sld [smem:[#allocation18_spill]]  ;;  %s4017_s26 = sld [smem:[#allocation19_spill]] }
 0x2bc   : > { %s4018_s1 = sld [smem:[#allocation20_spill]]  ;;  %s4019_s15 = smov %s3131_s16 }
 0x2bd   : > { %s4020_s16 = smov %s3135_s17  ;;  %s4021_s17 = smov %s3499_s0 }
 0x2be   : > { %s4022_s18 = smov %s3143_s19  ;;  %s4023_s19 = smov %s3147_s20 }
 0x2bf   : > { %s4024_s20 = smov %s3345_s13  ;;  %s4025_s21 = smov %s3155_s22 }
 0x2c0   : > { %s4026_s22 = smov %s4014_s23  ;;  %s4027_s23 = smov %s4015_s24 }
 0x2c1   : > { %s4028_s24 = smov %s4016_s10  ;;  %s4029_s25 = smov %s3175_s27 }
 0x2c2   : > { %s4030_s27 = smov %s4018_s1  ;;  %20 = sbr.rel (!%p3909_p7) target bundleno = 15 (0xf), region = 131 }
 0x2c9   :  { %1795 = vsyncpa [#allocation4], 1 }
 0x2ca   :  { %1797 = vsyncpa [#allocation4 + $0x1], 1 }
 0x2cb   :  { %1798 = vsyncpa [#allocation7], 1 }
 0x2cc   :  { %1799 = vsyncpa [#allocation5], 1 }
 0x2cd   :  { %1801 = vsyncpa [#allocation5 + $0x1], 1 }

</bundles_post_ra>
